<compile_context>
chip_gen: v7x
topology: tpu7x:2x2x1
jax: 0.10.0
libtpu: 0.0.40
codegen_flags: <defaults>
</compile_context>

<pallas_src>
import functools

import numpy as np
import jax
import jax.numpy as jnp
from jax import lax
from jax.experimental import pallas as pl
from jax.experimental.pallas import tpu as pltpu


SENTINEL = 1e15     # (xs - SENTINEL)^2 ~ 1e30 -> d ~ 3e15 >> L -> zero penalty, no overflow
NG = 8              # trajectories processed per group (their (8,128) minima stay in vregs)


# -----------------------------------------------------------------------------
# Grid-config parameters (mirrors gen_dx_bx / calculate_birds_eye_view_parameters)
# -----------------------------------------------------------------------------
def make_grid_params(grid_conf):
    xb, yb, zb = grid_conf["xbound"], grid_conf["ybound"], grid_conf["zbound"]
    dx = [xb[2], yb[2]]                                   # self.dx (first 2)
    bx = [xb[0] + xb[2] / 2.0, yb[0] + yb[2] / 2.0]       # self.bx (first 2)
    bev_dim = [int((row[1] - row[0]) / row[2]) for row in (xb, yb, zb)]
    return dx, bx, bev_dim


# -----------------------------------------------------------------------------
# Pallas kernel: per-batch min-distance to lane-divider cells + penalty.
#   xs_ref, ys_ref : SMEM f32 (Bp*Ng,)        -- scaled traj cell coords (xi*dx1, yi*dx0)
#   rrb_ref        : VMEM f32 (Bt, S_pad, 128)-- per-batch row coord * dx1, SENTINEL on lane==0
#   cc_ref         : VMEM f32 (S_pad, 128)    -- shared col coord * dx0
#   out_ref        : VMEM f32 (Bt, NP)        -- lane-dense output row per batch element
# -----------------------------------------------------------------------------
def _lr_divider_kernel(xs_ref, ys_ref, rrb_ref, cc_ref, out_ref, *,
                       Bt, N, Ng, NP, CHUNK, n_chunks, L, factor):
    g = pl.program_id(0)
    n_groups = Ng // NG
    BIG = jnp.float32(1e30)
    lane_pos = lax.broadcasted_iota(jnp.int32, (1, NP), 1)
    row_pos = lax.broadcasted_iota(jnp.int32, (Bt, 1), 0)

    out_acc = jnp.zeros((Bt, NP), jnp.float32)

    for b in range(Bt):                                   # static, <= 8
        off = (g * Bt + b) * Ng                           # scalar offset into SMEM coords

        def group_body(gi, out_row, b=b, off=off):
            # Per-group trajectory scalars, read once from SMEM (hoisted out of chunk loop).
            xs = [xs_ref[off + gi * NG + j] for j in range(NG)]
            ys = [ys_ref[off + gi * NG + j] for j in range(NG)]

            # One (8,128) running-minimum vreg per trajectory in the group.
            acc0 = tuple(jnp.full((8, 128), BIG, jnp.float32) for _ in range(NG))

            def chunk_body(ci, acc, b=b):
                row0 = pl.multiple_of(ci * CHUNK, CHUNK)
                rr_c = rrb_ref[b, pl.ds(row0, CHUNK), :]          # (CHUNK, 128)
                cc_c = cc_ref[pl.ds(row0, CHUNK), :]              # (CHUNK, 128)
                acc = list(acc)
                for j in range(NG):                               # static unroll (8)
                    a = acc[j]
                    for q in range(CHUNK // 8):                   # static unroll (<= 4)
                        rq = rr_c[q * 8:(q + 1) * 8, :]
                        cq = cc_c[q * 8:(q + 1) * 8, :]
                        dr = xs[j] - rq                           # exact (coords = k * dx)
                        dc = ys[j] - cq
                        a = jnp.minimum(a, dr * dr + dc * dc)     # 5 VPU ops / vreg
                    acc[j] = a
                return tuple(acc)

            acc = lax.fori_loop(0, n_chunks, chunk_body, acc0)

            # One cross-lane/sublane reduce per (b, n), results kept lane-dense.
            for j in range(NG):
                m = jnp.min(acc[j], keepdims=True)                # (1, 1)
                out_row = jnp.where(lane_pos == gi * NG + j, m, out_row)
            return out_row

        out_row = lax.fori_loop(0, n_groups, group_body,
                                jnp.zeros((1, NP), jnp.float32))

        # Single vector pass for sqrt / penalty / factor over the whole row.
        d = jnp.sqrt(jnp.maximum(out_row, 0.0))
        pen = jnp.where(d > L, jnp.float32(0.0), (L - d) * (L - d)) * factor
        pen = jnp.where(lane_pos < N, pen, jnp.float32(0.0))      # zero padded lanes
        out_acc = jnp.where(row_pos == b, pen, out_acc)

    out_ref[...] = out_acc                                        # one unmasked store


# -----------------------------------------------------------------------------
# Wrapper (discretize glue + layout prep + pallas_call)
# -----------------------------------------------------------------------------
def lr_divider_forward(trajs, lane_divider, grid_conf, L=1.0, factor=10.0):
    dx, bx, bev_dim = make_grid_params(grid_conf)
    B, N, _ = trajs.shape
    _, H, W = lane_divider.shape

    # BaseCost.discretize (truncation-toward-zero matches torch .long(); clamp to grid).
    xi = jnp.clip(((trajs[..., 0] - bx[0]) / dx[0]).astype(jnp.int32), 0, bev_dim[0] - 1)
    yi = jnp.clip(((trajs[..., 1] - bx[1]) / dx[1]).astype(jnp.int32), 0, bev_dim[1] - 1)
    # faithful to torch: (xy - index) * reversed(self.dx) -> row-diff * dx[1], col-diff * dx[0]
    xs = xi.astype(jnp.float32) * dx[1]
    ys = yi.astype(jnp.float32) * dx[0]

    # --- blocking choices ----------------------------------------------------
    Bt = max(1, min(8, pl.cdiv(B, 2)))        # grid >= 2 whenever B >= 2 (v7x: both TCs busy)
    Bp = pl.cdiv(B, Bt) * Bt
    Ng = pl.cdiv(N, NG) * NG                  # trajectories padded to the group size
    NP = max(128, pl.cdiv(N, 128) * 128)      # lane-dense output width

    HW = H * W
    S = pl.cdiv(HW, 128)
    S_pad = pl.cdiv(S, 8) * 8
    CHUNK = max(c for c in (32, 24, 16, 8) if S_pad % c == 0)
    n_chunks = S_pad // CHUNK
    HWp = S_pad * 128

    # --- coordinate planes: lane==0 / padding handling folded in here --------
    cell = np.arange(HWp, dtype=np.int64)
    rr = (cell // W).astype(np.float32) * np.float32(dx[1])   # row coord (matches xi*dx1)
    cc = (cell % W).astype(np.float32) * np.float32(dx[0])    # col coord (matches yi*dx0)
    ccf = jnp.asarray(cc.reshape(S_pad, 128))

    lane_flat = lane_divider.reshape(B, HW).astype(jnp.float32)
    lane_flat = jnp.pad(lane_flat, ((0, Bp - B), (0, HWp - HW)))   # pads == "no lane"
    rr_b = jnp.where(lane_flat != 0.0, jnp.asarray(rr)[None, :],
                     jnp.float32(SENTINEL)).reshape(Bp, S_pad, 128)

    # Flat 1-D scalar-prefetch coords (pad entries unused / masked in the kernel).
    xs_flat = jnp.zeros((Bp, Ng), jnp.float32).at[:B, :N].set(xs).reshape(Bp * Ng)
    ys_flat = jnp.zeros((Bp, Ng), jnp.float32).at[:B, :N].set(ys).reshape(Bp * Ng)

    kernel = functools.partial(_lr_divider_kernel, Bt=Bt, N=N, Ng=Ng, NP=NP,
                               CHUNK=CHUNK, n_chunks=n_chunks,
                               L=float(L), factor=float(factor))

    out = pl.pallas_call(
        kernel,
        out_shape=jax.ShapeDtypeStruct((Bp // Bt, Bt, NP), jnp.float32),
        grid_spec=pltpu.PrefetchScalarGridSpec(
            num_scalar_prefetch=2,                        # xs, ys live in SMEM
            grid=(Bp // Bt,),
            in_specs=[
                pl.BlockSpec((Bt, S_pad, 128), lambda g, xs_r, ys_r: (g, 0, 0)),
                pl.BlockSpec((S_pad, 128), lambda g, xs_r, ys_r: (0, 0)),
            ],
            out_specs=pl.BlockSpec((None, Bt, NP), lambda g, xs_r, ys_r: (g, 0, 0)),
        ),
        compiler_params=pltpu.CompilerParams(dimension_semantics=("parallel",)),
    )(xs_flat, ys_flat, rr_b, ccf)
    return out.reshape(Bp, NP)[:B, :N]


# -----------------------------------------------------------------------------
# Pure-numpy reference (mirrors the PyTorch forward, incl. the torch.nonzero path)
# -----------------------------------------------------------------------------
def _reference_numpy(trajs, lane, grid_conf, L=1.0, factor=10.0):
    dx, bx, bev_dim = make_grid_params(grid_conf)
    B, N, _ = trajs.shape
    xi = np.clip(((trajs[..., 0] - bx[0]) / dx[0]).astype(np.int64), 0, bev_dim[0] - 1)
    yi = np.clip(((trajs[..., 1] - bx[1]) / dx[1]).astype(np.int64), 0, bev_dim[1] - 1)
    xy = np.stack([xi, yi], axis=-1)
    rdx = np.array([dx[1], dx[0]], dtype=np.float32)      # reversed(self.dx)
    out = np.zeros((B, N), dtype=np.float32)
    for i in range(B):
        idx = np.argwhere(lane[i] != 0)
        if len(idx) == 0:
            continue
        diff = (xy[i][:, None, :] - idx[None, :, :]).astype(np.float32) * rdx
        dist = np.sqrt((diff ** 2).sum(-1)).min(-1)
        pen = (L - dist) ** 2
        pen[dist > L] = 0.0
        out[i] = pen
    return out * factor


if __name__ == "__main__":
    # --- config 1: BEV 64x64, B=3, N=8 (one empty batch exercises the nonzero-empty path)
    grid_conf = {
        "xbound": [-16.0, 16.0, 0.5],
        "ybound": [-8.0, 8.0, 0.25],
        "zbound": [-10.0, 10.0, 20.0],
    }
    dx, bx, bev_dim = make_grid_params(grid_conf)
    B, N = 3, 8
    H, W = bev_dim[0], bev_dim[1]

    key = jax.random.PRNGKey(0)
    k1, k2, k3, k4 = jax.random.split(key, 4)
    trajs = jax.random.uniform(k1, (B, N, 2), jnp.float32, minval=-10.0, maxval=10.0)
    lane_divider = (jax.random.uniform(k2, (B, H, W), jnp.float32) > 0.95).astype(jnp.float32)
    lane_divider = lane_divider.at[2].set(0.0)            # empty batch

    out = jax.block_until_ready(lr_divider_forward(trajs, lane_divider, grid_conf))
    ref = _reference_numpy(np.asarray(trajs), np.asarray(lane_divider), grid_conf)
    assert out.shape == (B, N)
    assert np.allclose(np.asarray(out), ref, rtol=1e-4, atol=1e-4), (np.asarray(out), ref)

    # --- config 2: odd sizes (HW not a multiple of 128, N not a multiple of 8, Bt=1)
    grid_conf2 = {
        "xbound": [-10.0, 10.0, 0.5],
        "ybound": [-6.0, 6.0, 0.5],
        "zbound": [-10.0, 10.0, 20.0],
    }
    _, _, bev_dim2 = make_grid_params(grid_conf2)
    B2, N2 = 2, 5
    H2, W2 = bev_dim2[0], bev_dim2[1]
    trajs2 = jax.random.uniform(k3, (B2, N2, 2), jnp.float32, minval=-8.0, maxval=8.0)
    lane2 = (jax.random.uniform(k4, (B2, H2, W2), jnp.float32) > 0.9).astype(jnp.float32)
    lane2 = lane2.at[1].set(0.0)                          # empty batch

    out2 = jax.block_until_ready(lr_divider_forward(trajs2, lane2, grid_conf2))
    ref2 = _reference_numpy(np.asarray(trajs2), np.asarray(lane2), grid_conf2)
    assert out2.shape == (B2, N2)
    assert np.allclose(np.asarray(out2), ref2, rtol=1e-4, atol=1e-4), (np.asarray(out2), ref2)

    print("KERNEL_OK")
</pallas_src>

<mosaic_0001>
module attributes {stable_mosaic.version = 11 : i64} {
  func.func @_lr_divider_kernel(%arg0: i32, %arg1: memref<32xf32, #tpu.memory_space<smem>>, %arg2: memref<32xf32, #tpu.memory_space<smem>>, %arg3: memref<2x32x128xf32, #tpu.memory_space<vmem>>, %arg4: memref<32x128xf32, #tpu.memory_space<vmem>>, %arg5: memref<1x2x128xf32, #tpu.memory_space<vmem>>) attributes {dimension_semantics = [#tpu.dimension_semantics<parallel>], iteration_bounds = array<i64: 2>, scalar_prefetch = 2 : i64, scratch_operands = 0 : i64, tpu.core_type = #tpu.core_type<tc>, window_params = [{transform_indices = @transform_0, window_bounds = array<i64: 2, 32, 128>}, {pipeline_mode = #tpu.pipeline_mode<synchronous>, transform_indices = @transform_1, window_bounds = array<i64: 32, 128>}, {transform_indices = @transform_2, window_bounds = array<i64: 1, 2, 128>}]} {
    %0 = tpu.iota {dimensions = array<i32: 1>} : vector<1x128xi32>
    %1 = tpu.iota {dimensions = array<i32: 0>} : vector<2x1xi32>
    %cst = arith.constant 0.000000e+00 : f32
    %2 = vector.broadcast %cst : f32 to vector<2x128xf32>
    %c2_i32 = arith.constant 2 : i32
    %3 = arith.muli %arg0, %c2_i32 : i32
    %c0_i32 = arith.constant 0 : i32
    %4 = arith.addi %3, %c0_i32 : i32
    %c8_i32 = arith.constant 8 : i32
    %5 = arith.muli %4, %c8_i32 : i32
    %cst_0 = arith.constant 0.000000e+00 : f32
    %6 = vector.broadcast %cst_0 : f32 to vector<1x128xf32>
    %cst_1 = arith.constant 1.000000e+30 : f32
    %c0_i32_2 = arith.constant 0 : i32
    %c8_i32_3 = arith.constant 8 : i32
    %7 = arith.muli %c0_i32_2, %c8_i32_3 : i32
    %8 = arith.addi %5, %7 : i32
    %c0_i32_4 = arith.constant 0 : i32
    %9 = arith.addi %8, %c0_i32_4 : i32
    %10 = arith.index_cast %9 : i32 to index
    %11 = memref.load %arg1[%10] : memref<32xf32, #tpu.memory_space<smem>>
    %c8_i32_5 = arith.constant 8 : i32
    %12 = arith.muli %c0_i32_2, %c8_i32_5 : i32
    %13 = arith.addi %5, %12 : i32
    %c1_i32 = arith.constant 1 : i32
    %14 = arith.addi %13, %c1_i32 : i32
    %15 = arith.index_cast %14 : i32 to index
    %16 = memref.load %arg1[%15] : memref<32xf32, #tpu.memory_space<smem>>
    %c8_i32_6 = arith.constant 8 : i32
    %17 = arith.muli %c0_i32_2, %c8_i32_6 : i32
    %18 = arith.addi %5, %17 : i32
    %c2_i32_7 = arith.constant 2 : i32
    %19 = arith.addi %18, %c2_i32_7 : i32
    %20 = arith.index_cast %19 : i32 to index
    %21 = memref.load %arg1[%20] : memref<32xf32, #tpu.memory_space<smem>>
    %c8_i32_8 = arith.constant 8 : i32
    %22 = arith.muli %c0_i32_2, %c8_i32_8 : i32
    %23 = arith.addi %5, %22 : i32
    %c3_i32 = arith.constant 3 : i32
    %24 = arith.addi %23, %c3_i32 : i32
    %25 = arith.index_cast %24 : i32 to index
    %26 = memref.load %arg1[%25] : memref<32xf32, #tpu.memory_space<smem>>
    %c8_i32_9 = arith.constant 8 : i32
    %27 = arith.muli %c0_i32_2, %c8_i32_9 : i32
    %28 = arith.addi %5, %27 : i32
    %c4_i32 = arith.constant 4 : i32
    %29 = arith.addi %28, %c4_i32 : i32
    %30 = arith.index_cast %29 : i32 to index
    %31 = memref.load %arg1[%30] : memref<32xf32, #tpu.memory_space<smem>>
    %c8_i32_10 = arith.constant 8 : i32
    %32 = arith.muli %c0_i32_2, %c8_i32_10 : i32
    %33 = arith.addi %5, %32 : i32
    %c5_i32 = arith.constant 5 : i32
    %34 = arith.addi %33, %c5_i32 : i32
    %35 = arith.index_cast %34 : i32 to index
    %36 = memref.load %arg1[%35] : memref<32xf32, #tpu.memory_space<smem>>
    %c8_i32_11 = arith.constant 8 : i32
    %37 = arith.muli %c0_i32_2, %c8_i32_11 : i32
    %38 = arith.addi %5, %37 : i32
    %c6_i32 = arith.constant 6 : i32
    %39 = arith.addi %38, %c6_i32 : i32
    %40 = arith.index_cast %39 : i32 to index
    %41 = memref.load %arg1[%40] : memref<32xf32, #tpu.memory_space<smem>>
    %c8_i32_12 = arith.constant 8 : i32
    %42 = arith.muli %c0_i32_2, %c8_i32_12 : i32
    %43 = arith.addi %5, %42 : i32
    %c7_i32 = arith.constant 7 : i32
    %44 = arith.addi %43, %c7_i32 : i32
    %45 = arith.index_cast %44 : i32 to index
    %46 = memref.load %arg1[%45] : memref<32xf32, #tpu.memory_space<smem>>
    %c8_i32_13 = arith.constant 8 : i32
    %47 = arith.muli %c0_i32_2, %c8_i32_13 : i32
    %48 = arith.addi %5, %47 : i32
    %c0_i32_14 = arith.constant 0 : i32
    %49 = arith.addi %48, %c0_i32_14 : i32
    %50 = arith.index_cast %49 : i32 to index
    %51 = memref.load %arg2[%50] : memref<32xf32, #tpu.memory_space<smem>>
    %c8_i32_15 = arith.constant 8 : i32
    %52 = arith.muli %c0_i32_2, %c8_i32_15 : i32
    %53 = arith.addi %5, %52 : i32
    %c1_i32_16 = arith.constant 1 : i32
    %54 = arith.addi %53, %c1_i32_16 : i32
    %55 = arith.index_cast %54 : i32 to index
    %56 = memref.load %arg2[%55] : memref<32xf32, #tpu.memory_space<smem>>
    %c8_i32_17 = arith.constant 8 : i32
    %57 = arith.muli %c0_i32_2, %c8_i32_17 : i32
    %58 = arith.addi %5, %57 : i32
    %c2_i32_18 = arith.constant 2 : i32
    %59 = arith.addi %58, %c2_i32_18 : i32
    %60 = arith.index_cast %59 : i32 to index
    %61 = memref.load %arg2[%60] : memref<32xf32, #tpu.memory_space<smem>>
    %c8_i32_19 = arith.constant 8 : i32
    %62 = arith.muli %c0_i32_2, %c8_i32_19 : i32
    %63 = arith.addi %5, %62 : i32
    %c3_i32_20 = arith.constant 3 : i32
    %64 = arith.addi %63, %c3_i32_20 : i32
    %65 = arith.index_cast %64 : i32 to index
    %66 = memref.load %arg2[%65] : memref<32xf32, #tpu.memory_space<smem>>
    %c8_i32_21 = arith.constant 8 : i32
    %67 = arith.muli %c0_i32_2, %c8_i32_21 : i32
    %68 = arith.addi %5, %67 : i32
    %c4_i32_22 = arith.constant 4 : i32
    %69 = arith.addi %68, %c4_i32_22 : i32
    %70 = arith.index_cast %69 : i32 to index
    %71 = memref.load %arg2[%70] : memref<32xf32, #tpu.memory_space<smem>>
    %c8_i32_23 = arith.constant 8 : i32
    %72 = arith.muli %c0_i32_2, %c8_i32_23 : i32
    %73 = arith.addi %5, %72 : i32
    %c5_i32_24 = arith.constant 5 : i32
    %74 = arith.addi %73, %c5_i32_24 : i32
    %75 = arith.index_cast %74 : i32 to index
    %76 = memref.load %arg2[%75] : memref<32xf32, #tpu.memory_space<smem>>
    %c8_i32_25 = arith.constant 8 : i32
    %77 = arith.muli %c0_i32_2, %c8_i32_25 : i32
    %78 = arith.addi %5, %77 : i32
    %c6_i32_26 = arith.constant 6 : i32
    %79 = arith.addi %78, %c6_i32_26 : i32
    %80 = arith.index_cast %79 : i32 to index
    %81 = memref.load %arg2[%80] : memref<32xf32, #tpu.memory_space<smem>>
    %c8_i32_27 = arith.constant 8 : i32
    %82 = arith.muli %c0_i32_2, %c8_i32_27 : i32
    %83 = arith.addi %5, %82 : i32
    %c7_i32_28 = arith.constant 7 : i32
    %84 = arith.addi %83, %c7_i32_28 : i32
    %85 = arith.index_cast %84 : i32 to index
    %86 = memref.load %arg2[%85] : memref<32xf32, #tpu.memory_space<smem>>
    %87 = vector.broadcast %cst_1 : f32 to vector<8x128xf32>
    %88 = vector.broadcast %cst_1 : f32 to vector<8x128xf32>
    %89 = vector.broadcast %cst_1 : f32 to vector<8x128xf32>
    %90 = vector.broadcast %cst_1 : f32 to vector<8x128xf32>
    %91 = vector.broadcast %cst_1 : f32 to vector<8x128xf32>
    %92 = vector.broadcast %cst_1 : f32 to vector<8x128xf32>
    %93 = vector.broadcast %cst_1 : f32 to vector<8x128xf32>
    %94 = vector.broadcast %cst_1 : f32 to vector<8x128xf32>
    %c0_i32_29 = arith.constant 0 : i32
    %c32_i32 = arith.constant 32 : i32
    %95 = arith.muli %c0_i32_29, %c32_i32 : i32
    %96 = tpu.assume_multiple %95, 32 : i32
    %c0 = arith.constant 0 : index
    %97 = arith.index_cast %96 : i32 to index
    %c0_30 = arith.constant 0 : index
    %98 = vector.load %arg3[%c0, %97, %c0_30] : memref<2x32x128xf32, #tpu.memory_space<vmem>>, vector<1x32x128xf32>
    %99 = vector.shape_cast %98 : vector<1x32x128xf32> to vector<32x128xf32>
    %100 = arith.index_cast %96 : i32 to index
    %c0_31 = arith.constant 0 : index
    %101 = vector.load %arg4[%100, %c0_31] : memref<32x128xf32, #tpu.memory_space<vmem>>, vector<32x128xf32>
    %102 = vector.extract_strided_slice %99 {offsets = [0, 0], sizes = [8, 128], strides = [1, 1]} : vector<32x128xf32> to vector<8x128xf32>
    %103 = vector.extract_strided_slice %101 {offsets = [0, 0], sizes = [8, 128], strides = [1, 1]} : vector<32x128xf32> to vector<8x128xf32>
    %104 = vector.broadcast %11 : f32 to vector<8x128xf32>
    %105 = arith.subf %104, %102 : vector<8x128xf32>
    %106 = vector.broadcast %51 : f32 to vector<8x128xf32>
    %107 = arith.subf %106, %103 : vector<8x128xf32>
    %108 = arith.mulf %105, %105 : vector<8x128xf32>
    %109 = arith.mulf %107, %107 : vector<8x128xf32>
    %110 = arith.addf %108, %109 : vector<8x128xf32>
    %111 = arith.minimumf %87, %110 : vector<8x128xf32>
    %112 = vector.extract_strided_slice %99 {offsets = [8, 0], sizes = [8, 128], strides = [1, 1]} : vector<32x128xf32> to vector<8x128xf32>
    %113 = vector.extract_strided_slice %101 {offsets = [8, 0], sizes = [8, 128], strides = [1, 1]} : vector<32x128xf32> to vector<8x128xf32>
    %114 = vector.broadcast %11 : f32 to vector<8x128xf32>
    %115 = arith.subf %114, %112 : vector<8x128xf32>
    %116 = vector.broadcast %51 : f32 to vector<8x128xf32>
    %117 = arith.subf %116, %113 : vector<8x128xf32>
    %118 = arith.mulf %115, %115 : vector<8x128xf32>
    %119 = arith.mulf %117, %117 : vector<8x128xf32>
    %120 = arith.addf %118, %119 : vector<8x128xf32>
    %121 = arith.minimumf %111, %120 : vector<8x128xf32>
    %122 = vector.extract_strided_slice %99 {offsets = [16, 0], sizes = [8, 128], strides = [1, 1]} : vector<32x128xf32> to vector<8x128xf32>
    %123 = vector.extract_strided_slice %101 {offsets = [16, 0], sizes = [8, 128], strides = [1, 1]} : vector<32x128xf32> to vector<8x128xf32>
    %124 = vector.broadcast %11 : f32 to vector<8x128xf32>
    %125 = arith.subf %124, %122 : vector<8x128xf32>
    %126 = vector.broadcast %51 : f32 to vector<8x128xf32>
    %127 = arith.subf %126, %123 : vector<8x128xf32>
    %128 = arith.mulf %125, %125 : vector<8x128xf32>
    %129 = arith.mulf %127, %127 : vector<8x128xf32>
    %130 = arith.addf %128, %129 : vector<8x128xf32>
    %131 = arith.minimumf %121, %130 : vector<8x128xf32>
    %132 = vector.extract_strided_slice %99 {offsets = [24, 0], sizes = [8, 128], strides = [1, 1]} : vector<32x128xf32> to vector<8x128xf32>
    %133 = vector.extract_strided_slice %101 {offsets = [24, 0], sizes = [8, 128], strides = [1, 1]} : vector<32x128xf32> to vector<8x128xf32>
    %134 = vector.broadcast %11 : f32 to vector<8x128xf32>
    %135 = arith.subf %134, %132 : vector<8x128xf32>
    %136 = vector.broadcast %51 : f32 to vector<8x128xf32>
    %137 = arith.subf %136, %133 : vector<8x128xf32>
    %138 = arith.mulf %135, %135 : vector<8x128xf32>
    %139 = arith.mulf %137, %137 : vector<8x128xf32>
    %140 = arith.addf %138, %139 : vector<8x128xf32>
    %141 = arith.minimumf %131, %140 : vector<8x128xf32>
    %142 = vector.extract_strided_slice %99 {offsets = [0, 0], sizes = [8, 128], strides = [1, 1]} : vector<32x128xf32> to vector<8x128xf32>
    %143 = vector.extract_strided_slice %101 {offsets = [0, 0], sizes = [8, 128], strides = [1, 1]} : vector<32x128xf32> to vector<8x128xf32>
    %144 = vector.broadcast %16 : f32 to vector<8x128xf32>
    %145 = arith.subf %144, %142 : vector<8x128xf32>
    %146 = vector.broadcast %56 : f32 to vector<8x128xf32>
    %147 = arith.subf %146, %143 : vector<8x128xf32>
    %148 = arith.mulf %145, %145 : vector<8x128xf32>
    %149 = arith.mulf %147, %147 : vector<8x128xf32>
    %150 = arith.addf %148, %149 : vector<8x128xf32>
    %151 = arith.minimumf %88, %150 : vector<8x128xf32>
    %152 = vector.extract_strided_slice %99 {offsets = [8, 0], sizes = [8, 128], strides = [1, 1]} : vector<32x128xf32> to vector<8x128xf32>
    %153 = vector.extract_strided_slice %101 {offsets = [8, 0], sizes = [8, 128], strides = [1, 1]} : vector<32x128xf32> to vector<8x128xf32>
    %154 = vector.broadcast %16 : f32 to vector<8x128xf32>
    %155 = arith.subf %154, %152 : vector<8x128xf32>
    %156 = vector.broadcast %56 : f32 to vector<8x128xf32>
    %157 = arith.subf %156, %153 : vector<8x128xf32>
    %158 = arith.mulf %155, %155 : vector<8x128xf32>
    %159 = arith.mulf %157, %157 : vector<8x128xf32>
    %160 = arith.addf %158, %159 : vector<8x128xf32>
    %161 = arith.minimumf %151, %160 : vector<8x128xf32>
    %162 = vector.extract_strided_slice %99 {offsets = [16, 0], sizes = [8, 128], strides = [1, 1]} : vector<32x128xf32> to vector<8x128xf32>
    %163 = vector.extract_strided_slice %101 {offsets = [16, 0], sizes = [8, 128], strides = [1, 1]} : vector<32x128xf32> to vector<8x128xf32>
    %164 = vector.broadcast %16 : f32 to vector<8x128xf32>
    %165 = arith.subf %164, %162 : vector<8x128xf32>
    %166 = vector.broadcast %56 : f32 to vector<8x128xf32>
    %167 = arith.subf %166, %163 : vector<8x128xf32>
    %168 = arith.mulf %165, %165 : vector<8x128xf32>
    %169 = arith.mulf %167, %167 : vector<8x128xf32>
    %170 = arith.addf %168, %169 : vector<8x128xf32>
    %171 = arith.minimumf %161, %170 : vector<8x128xf32>
    %172 = vector.extract_strided_slice %99 {offsets = [24, 0], sizes = [8, 128], strides = [1, 1]} : vector<32x128xf32> to vector<8x128xf32>
    %173 = vector.extract_strided_slice %101 {offsets = [24, 0], sizes = [8, 128], strides = [1, 1]} : vector<32x128xf32> to vector<8x128xf32>
    %174 = vector.broadcast %16 : f32 to vector<8x128xf32>
    %175 = arith.subf %174, %172 : vector<8x128xf32>
    %176 = vector.broadcast %56 : f32 to vector<8x128xf32>
    %177 = arith.subf %176, %173 : vector<8x128xf32>
    %178 = arith.mulf %175, %175 : vector<8x128xf32>
    %179 = arith.mulf %177, %177 : vector<8x128xf32>
    %180 = arith.addf %178, %179 : vector<8x128xf32>
    %181 = arith.minimumf %171, %180 : vector<8x128xf32>
    %182 = vector.extract_strided_slice %99 {offsets = [0, 0], sizes = [8, 128], strides = [1, 1]} : vector<32x128xf32> to vector<8x128xf32>
    %183 = vector.extract_strided_slice %101 {offsets = [0, 0], sizes = [8, 128], strides = [1, 1]} : vector<32x128xf32> to vector<8x128xf32>
    %184 = vector.broadcast %21 : f32 to vector<8x128xf32>
    %185 = arith.subf %184, %182 : vector<8x128xf32>
    %186 = vector.broadcast %61 : f32 to vector<8x128xf32>
    %187 = arith.subf %186, %183 : vector<8x128xf32>
    %188 = arith.mulf %185, %185 : vector<8x128xf32>
    %189 = arith.mulf %187, %187 : vector<8x128xf32>
    %190 = arith.addf %188, %189 : vector<8x128xf32>
    %191 = arith.minimumf %89, %190 : vector<8x128xf32>
    %192 = vector.extract_strided_slice %99 {offsets = [8, 0], sizes = [8, 128], strides = [1, 1]} : vector<32x128xf32> to vector<8x128xf32>
    %193 = vector.extract_strided_slice %101 {offsets = [8, 0], sizes = [8, 128], strides = [1, 1]} : vector<32x128xf32> to vector<8x128xf32>
    %194 = vector.broadcast %21 : f32 to vector<8x128xf32>
    %195 = arith.subf %194, %192 : vector<8x128xf32>
    %196 = vector.broadcast %61 : f32 to vector<8x128xf32>
    %197 = arith.subf %196, %193 : vector<8x128xf32>
    %198 = arith.mulf %195, %195 : vector<8x128xf32>
    %199 = arith.mulf %197, %197 : vector<8x128xf32>
    %200 = arith.addf %198, %199 : vector<8x128xf32>
    %201 = arith.minimumf %191, %200 : vector<8x128xf32>
    %202 = vector.extract_strided_slice %99 {offsets = [16, 0], sizes = [8, 128], strides = [1, 1]} : vector<32x128xf32> to vector<8x128xf32>
    %203 = vector.extract_strided_slice %101 {offsets = [16, 0], sizes = [8, 128], strides = [1, 1]} : vector<32x128xf32> to vector<8x128xf32>
    %204 = vector.broadcast %21 : f32 to vector<8x128xf32>
    %205 = arith.subf %204, %202 : vector<8x128xf32>
    %206 = vector.broadcast %61 : f32 to vector<8x128xf32>
    %207 = arith.subf %206, %203 : vector<8x128xf32>
    %208 = arith.mulf %205, %205 : vector<8x128xf32>
    %209 = arith.mulf %207, %207 : vector<8x128xf32>
    %210 = arith.addf %208, %209 : vector<8x128xf32>
    %211 = arith.minimumf %201, %210 : vector<8x128xf32>
    %212 = vector.extract_strided_slice %99 {offsets = [24, 0], sizes = [8, 128], strides = [1, 1]} : vector<32x128xf32> to vector<8x128xf32>
    %213 = vector.extract_strided_slice %101 {offsets = [24, 0], sizes = [8, 128], strides = [1, 1]} : vector<32x128xf32> to vector<8x128xf32>
    %214 = vector.broadcast %21 : f32 to vector<8x128xf32>
    %215 = arith.subf %214, %212 : vector<8x128xf32>
    %216 = vector.broadcast %61 : f32 to vector<8x128xf32>
    %217 = arith.subf %216, %213 : vector<8x128xf32>
    %218 = arith.mulf %215, %215 : vector<8x128xf32>
    %219 = arith.mulf %217, %217 : vector<8x128xf32>
    %220 = arith.addf %218, %219 : vector<8x128xf32>
    %221 = arith.minimumf %211, %220 : vector<8x128xf32>
    %222 = vector.extract_strided_slice %99 {offsets = [0, 0], sizes = [8, 128], strides = [1, 1]} : vector<32x128xf32> to vector<8x128xf32>
    %223 = vector.extract_strided_slice %101 {offsets = [0, 0], sizes = [8, 128], strides = [1, 1]} : vector<32x128xf32> to vector<8x128xf32>
    %224 = vector.broadcast %26 : f32 to vector<8x128xf32>
    %225 = arith.subf %224, %222 : vector<8x128xf32>
    %226 = vector.broadcast %66 : f32 to vector<8x128xf32>
    %227 = arith.subf %226, %223 : vector<8x128xf32>
    %228 = arith.mulf %225, %225 : vector<8x128xf32>
    %229 = arith.mulf %227, %227 : vector<8x128xf32>
    %230 = arith.addf %228, %229 : vector<8x128xf32>
    %231 = arith.minimumf %90, %230 : vector<8x128xf32>
    %232 = vector.extract_strided_slice %99 {offsets = [8, 0], sizes = [8, 128], strides = [1, 1]} : vector<32x128xf32> to vector<8x128xf32>
    %233 = vector.extract_strided_slice %101 {offsets = [8, 0], sizes = [8, 128], strides = [1, 1]} : vector<32x128xf32> to vector<8x128xf32>
    %234 = vector.broadcast %26 : f32 to vector<8x128xf32>
    %235 = arith.subf %234, %232 : vector<8x128xf32>
    %236 = vector.broadcast %66 : f32 to vector<8x128xf32>
    %237 = arith.subf %236, %233 : vector<8x128xf32>
    %238 = arith.mulf %235, %235 : vector<8x128xf32>
    %239 = arith.mulf %237, %237 : vector<8x128xf32>
    %240 = arith.addf %238, %239 : vector<8x128xf32>
    %241 = arith.minimumf %231, %240 : vector<8x128xf32>
    %242 = vector.extract_strided_slice %99 {offsets = [16, 0], sizes = [8, 128], strides = [1, 1]} : vector<32x128xf32> to vector<8x128xf32>
    %243 = vector.extract_strided_slice %101 {offsets = [16, 0], sizes = [8, 128], strides = [1, 1]} : vector<32x128xf32> to vector<8x128xf32>
    %244 = vector.broadcast %26 : f32 to vector<8x128xf32>
    %245 = arith.subf %244, %242 : vector<8x128xf32>
    %246 = vector.broadcast %66 : f32 to vector<8x128xf32>
    %247 = arith.subf %246, %243 : vector<8x128xf32>
    %248 = arith.mulf %245, %245 : vector<8x128xf32>
    %249 = arith.mulf %247, %247 : vector<8x128xf32>
    %250 = arith.addf %248, %249 : vector<8x128xf32>
    %251 = arith.minimumf %241, %250 : vector<8x128xf32>
    %252 = vector.extract_strided_slice %99 {offsets = [24, 0], sizes = [8, 128], strides = [1, 1]} : vector<32x128xf32> to vector<8x128xf32>
    %253 = vector.extract_strided_slice %101 {offsets = [24, 0], sizes = [8, 128], strides = [1, 1]} : vector<32x128xf32> to vector<8x128xf32>
    %254 = vector.broadcast %26 : f32 to vector<8x128xf32>
    %255 = arith.subf %254, %252 : vector<8x128xf32>
    %256 = vector.broadcast %66 : f32 to vector<8x128xf32>
    %257 = arith.subf %256, %253 : vector<8x128xf32>
    %258 = arith.mulf %255, %255 : vector<8x128xf32>
    %259 = arith.mulf %257, %257 : vector<8x128xf32>
    %260 = arith.addf %258, %259 : vector<8x128xf32>
    %261 = arith.minimumf %251, %260 : vector<8x128xf32>
    %262 = vector.extract_strided_slice %99 {offsets = [0, 0], sizes = [8, 128], strides = [1, 1]} : vector<32x128xf32> to vector<8x128xf32>
    %263 = vector.extract_strided_slice %101 {offsets = [0, 0], sizes = [8, 128], strides = [1, 1]} : vector<32x128xf32> to vector<8x128xf32>
    %264 = vector.broadcast %31 : f32 to vector<8x128xf32>
    %265 = arith.subf %264, %262 : vector<8x128xf32>
    %266 = vector.broadcast %71 : f32 to vector<8x128xf32>
    %267 = arith.subf %266, %263 : vector<8x128xf32>
    %268 = arith.mulf %265, %265 : vector<8x128xf32>
    %269 = arith.mulf %267, %267 : vector<8x128xf32>
    %270 = arith.addf %268, %269 : vector<8x128xf32>
    %271 = arith.minimumf %91, %270 : vector<8x128xf32>
    %272 = vector.extract_strided_slice %99 {offsets = [8, 0], sizes = [8, 128], strides = [1, 1]} : vector<32x128xf32> to vector<8x128xf32>
    %273 = vector.extract_strided_slice %101 {offsets = [8, 0], sizes = [8, 128], strides = [1, 1]} : vector<32x128xf32> to vector<8x128xf32>
    %274 = vector.broadcast %31 : f32 to vector<8x128xf32>
    %275 = arith.subf %274, %272 : vector<8x128xf32>
    %276 = vector.broadcast %71 : f32 to vector<8x128xf32>
    %277 = arith.subf %276, %273 : vector<8x128xf32>
    %278 = arith.mulf %275, %275 : vector<8x128xf32>
    %279 = arith.mulf %277, %277 : vector<8x128xf32>
    %280 = arith.addf %278, %279 : vector<8x128xf32>
    %281 = arith.minimumf %271, %280 : vector<8x128xf32>
    %282 = vector.extract_strided_slice %99 {offsets = [16, 0], sizes = [8, 128], strides = [1, 1]} : vector<32x128xf32> to vector<8x128xf32>
    %283 = vector.extract_strided_slice %101 {offsets = [16, 0], sizes = [8, 128], strides = [1, 1]} : vector<32x128xf32> to vector<8x128xf32>
    %284 = vector.broadcast %31 : f32 to vector<8x128xf32>
    %285 = arith.subf %284, %282 : vector<8x128xf32>
    %286 = vector.broadcast %71 : f32 to vector<8x128xf32>
    %287 = arith.subf %286, %283 : vector<8x128xf32>
    %288 = arith.mulf %285, %285 : vector<8x128xf32>
    %289 = arith.mulf %287, %287 : vector<8x128xf32>
    %290 = arith.addf %288, %289 : vector<8x128xf32>
    %291 = arith.minimumf %281, %290 : vector<8x128xf32>
    %292 = vector.extract_strided_slice %99 {offsets = [24, 0], sizes = [8, 128], strides = [1, 1]} : vector<32x128xf32> to vector<8x128xf32>
    %293 = vector.extract_strided_slice %101 {offsets = [24, 0], sizes = [8, 128], strides = [1, 1]} : vector<32x128xf32> to vector<8x128xf32>
    %294 = vector.broadcast %31 : f32 to vector<8x128xf32>
    %295 = arith.subf %294, %292 : vector<8x128xf32>
    %296 = vector.broadcast %71 : f32 to vector<8x128xf32>
    %297 = arith.subf %296, %293 : vector<8x128xf32>
    %298 = arith.mulf %295, %295 : vector<8x128xf32>
    %299 = arith.mulf %297, %297 : vector<8x128xf32>
    %300 = arith.addf %298, %299 : vector<8x128xf32>
    %301 = arith.minimumf %291, %300 : vector<8x128xf32>
    %302 = vector.extract_strided_slice %99 {offsets = [0, 0], sizes = [8, 128], strides = [1, 1]} : vector<32x128xf32> to vector<8x128xf32>
    %303 = vector.extract_strided_slice %101 {offsets = [0, 0], sizes = [8, 128], strides = [1, 1]} : vector<32x128xf32> to vector<8x128xf32>
    %304 = vector.broadcast %36 : f32 to vector<8x128xf32>
    %305 = arith.subf %304, %302 : vector<8x128xf32>
    %306 = vector.broadcast %76 : f32 to vector<8x128xf32>
    %307 = arith.subf %306, %303 : vector<8x128xf32>
    %308 = arith.mulf %305, %305 : vector<8x128xf32>
    %309 = arith.mulf %307, %307 : vector<8x128xf32>
    %310 = arith.addf %308, %309 : vector<8x128xf32>
    %311 = arith.minimumf %92, %310 : vector<8x128xf32>
    %312 = vector.extract_strided_slice %99 {offsets = [8, 0], sizes = [8, 128], strides = [1, 1]} : vector<32x128xf32> to vector<8x128xf32>
    %313 = vector.extract_strided_slice %101 {offsets = [8, 0], sizes = [8, 128], strides = [1, 1]} : vector<32x128xf32> to vector<8x128xf32>
    %314 = vector.broadcast %36 : f32 to vector<8x128xf32>
    %315 = arith.subf %314, %312 : vector<8x128xf32>
    %316 = vector.broadcast %76 : f32 to vector<8x128xf32>
    %317 = arith.subf %316, %313 : vector<8x128xf32>
    %318 = arith.mulf %315, %315 : vector<8x128xf32>
    %319 = arith.mulf %317, %317 : vector<8x128xf32>
    %320 = arith.addf %318, %319 : vector<8x128xf32>
    %321 = arith.minimumf %311, %320 : vector<8x128xf32>
    %322 = vector.extract_strided_slice %99 {offsets = [16, 0], sizes = [8, 128], strides = [1, 1]} : vector<32x128xf32> to vector<8x128xf32>
    %323 = vector.extract_strided_slice %101 {offsets = [16, 0], sizes = [8, 128], strides = [1, 1]} : vector<32x128xf32> to vector<8x128xf32>
    %324 = vector.broadcast %36 : f32 to vector<8x128xf32>
    %325 = arith.subf %324, %322 : vector<8x128xf32>
    %326 = vector.broadcast %76 : f32 to vector<8x128xf32>
    %327 = arith.subf %326, %323 : vector<8x128xf32>
    %328 = arith.mulf %325, %325 : vector<8x128xf32>
    %329 = arith.mulf %327, %327 : vector<8x128xf32>
    %330 = arith.addf %328, %329 : vector<8x128xf32>
    %331 = arith.minimumf %321, %330 : vector<8x128xf32>
    %332 = vector.extract_strided_slice %99 {offsets = [24, 0], sizes = [8, 128], strides = [1, 1]} : vector<32x128xf32> to vector<8x128xf32>
    %333 = vector.extract_strided_slice %101 {offsets = [24, 0], sizes = [8, 128], strides = [1, 1]} : vector<32x128xf32> to vector<8x128xf32>
    %334 = vector.broadcast %36 : f32 to vector<8x128xf32>
    %335 = arith.subf %334, %332 : vector<8x128xf32>
    %336 = vector.broadcast %76 : f32 to vector<8x128xf32>
    %337 = arith.subf %336, %333 : vector<8x128xf32>
    %338 = arith.mulf %335, %335 : vector<8x128xf32>
    %339 = arith.mulf %337, %337 : vector<8x128xf32>
    %340 = arith.addf %338, %339 : vector<8x128xf32>
    %341 = arith.minimumf %331, %340 : vector<8x128xf32>
    %342 = vector.extract_strided_slice %99 {offsets = [0, 0], sizes = [8, 128], strides = [1, 1]} : vector<32x128xf32> to vector<8x128xf32>
    %343 = vector.extract_strided_slice %101 {offsets = [0, 0], sizes = [8, 128], strides = [1, 1]} : vector<32x128xf32> to vector<8x128xf32>
    %344 = vector.broadcast %41 : f32 to vector<8x128xf32>
    %345 = arith.subf %344, %342 : vector<8x128xf32>
    %346 = vector.broadcast %81 : f32 to vector<8x128xf32>
    %347 = arith.subf %346, %343 : vector<8x128xf32>
    %348 = arith.mulf %345, %345 : vector<8x128xf32>
    %349 = arith.mulf %347, %347 : vector<8x128xf32>
    %350 = arith.addf %348, %349 : vector<8x128xf32>
    %351 = arith.minimumf %93, %350 : vector<8x128xf32>
    %352 = vector.extract_strided_slice %99 {offsets = [8, 0], sizes = [8, 128], strides = [1, 1]} : vector<32x128xf32> to vector<8x128xf32>
    %353 = vector.extract_strided_slice %101 {offsets = [8, 0], sizes = [8, 128], strides = [1, 1]} : vector<32x128xf32> to vector<8x128xf32>
    %354 = vector.broadcast %41 : f32 to vector<8x128xf32>
    %355 = arith.subf %354, %352 : vector<8x128xf32>
    %356 = vector.broadcast %81 : f32 to vector<8x128xf32>
    %357 = arith.subf %356, %353 : vector<8x128xf32>
    %358 = arith.mulf %355, %355 : vector<8x128xf32>
    %359 = arith.mulf %357, %357 : vector<8x128xf32>
    %360 = arith.addf %358, %359 : vector<8x128xf32>
    %361 = arith.minimumf %351, %360 : vector<8x128xf32>
    %362 = vector.extract_strided_slice %99 {offsets = [16, 0], sizes = [8, 128], strides = [1, 1]} : vector<32x128xf32> to vector<8x128xf32>
    %363 = vector.extract_strided_slice %101 {offsets = [16, 0], sizes = [8, 128], strides = [1, 1]} : vector<32x128xf32> to vector<8x128xf32>
    %364 = vector.broadcast %41 : f32 to vector<8x128xf32>
    %365 = arith.subf %364, %362 : vector<8x128xf32>
    %366 = vector.broadcast %81 : f32 to vector<8x128xf32>
    %367 = arith.subf %366, %363 : vector<8x128xf32>
    %368 = arith.mulf %365, %365 : vector<8x128xf32>
    %369 = arith.mulf %367, %367 : vector<8x128xf32>
    %370 = arith.addf %368, %369 : vector<8x128xf32>
    %371 = arith.minimumf %361, %370 : vector<8x128xf32>
    %372 = vector.extract_strided_slice %99 {offsets = [24, 0], sizes = [8, 128], strides = [1, 1]} : vector<32x128xf32> to vector<8x128xf32>
    %373 = vector.extract_strided_slice %101 {offsets = [24, 0], sizes = [8, 128], strides = [1, 1]} : vector<32x128xf32> to vector<8x128xf32>
    %374 = vector.broadcast %41 : f32 to vector<8x128xf32>
    %375 = arith.subf %374, %372 : vector<8x128xf32>
    %376 = vector.broadcast %81 : f32 to vector<8x128xf32>
    %377 = arith.subf %376, %373 : vector<8x128xf32>
    %378 = arith.mulf %375, %375 : vector<8x128xf32>
    %379 = arith.mulf %377, %377 : vector<8x128xf32>
    %380 = arith.addf %378, %379 : vector<8x128xf32>
    %381 = arith.minimumf %371, %380 : vector<8x128xf32>
    %382 = vector.extract_strided_slice %99 {offsets = [0, 0], sizes = [8, 128], strides = [1, 1]} : vector<32x128xf32> to vector<8x128xf32>
    %383 = vector.extract_strided_slice %101 {offsets = [0, 0], sizes = [8, 128], strides = [1, 1]} : vector<32x128xf32> to vector<8x128xf32>
    %384 = vector.broadcast %46 : f32 to vector<8x128xf32>
    %385 = arith.subf %384, %382 : vector<8x128xf32>
    %386 = vector.broadcast %86 : f32 to vector<8x128xf32>
    %387 = arith.subf %386, %383 : vector<8x128xf32>
    %388 = arith.mulf %385, %385 : vector<8x128xf32>
    %389 = arith.mulf %387, %387 : vector<8x128xf32>
    %390 = arith.addf %388, %389 : vector<8x128xf32>
    %391 = arith.minimumf %94, %390 : vector<8x128xf32>
    %392 = vector.extract_strided_slice %99 {offsets = [8, 0], sizes = [8, 128], strides = [1, 1]} : vector<32x128xf32> to vector<8x128xf32>
    %393 = vector.extract_strided_slice %101 {offsets = [8, 0], sizes = [8, 128], strides = [1, 1]} : vector<32x128xf32> to vector<8x128xf32>
    %394 = vector.broadcast %46 : f32 to vector<8x128xf32>
    %395 = arith.subf %394, %392 : vector<8x128xf32>
    %396 = vector.broadcast %86 : f32 to vector<8x128xf32>
    %397 = arith.subf %396, %393 : vector<8x128xf32>
    %398 = arith.mulf %395, %395 : vector<8x128xf32>
    %399 = arith.mulf %397, %397 : vector<8x128xf32>
    %400 = arith.addf %398, %399 : vector<8x128xf32>
    %401 = arith.minimumf %391, %400 : vector<8x128xf32>
    %402 = vector.extract_strided_slice %99 {offsets = [16, 0], sizes = [8, 128], strides = [1, 1]} : vector<32x128xf32> to vector<8x128xf32>
    %403 = vector.extract_strided_slice %101 {offsets = [16, 0], sizes = [8, 128], strides = [1, 1]} : vector<32x128xf32> to vector<8x128xf32>
    %404 = vector.broadcast %46 : f32 to vector<8x128xf32>
    %405 = arith.subf %404, %402 : vector<8x128xf32>
    %406 = vector.broadcast %86 : f32 to vector<8x128xf32>
    %407 = arith.subf %406, %403 : vector<8x128xf32>
    %408 = arith.mulf %405, %405 : vector<8x128xf32>
    %409 = arith.mulf %407, %407 : vector<8x128xf32>
    %410 = arith.addf %408, %409 : vector<8x128xf32>
    %411 = arith.minimumf %401, %410 : vector<8x128xf32>
    %412 = vector.extract_strided_slice %99 {offsets = [24, 0], sizes = [8, 128], strides = [1, 1]} : vector<32x128xf32> to vector<8x128xf32>
    %413 = vector.extract_strided_slice %101 {offsets = [24, 0], sizes = [8, 128], strides = [1, 1]} : vector<32x128xf32> to vector<8x128xf32>
    %414 = vector.broadcast %46 : f32 to vector<8x128xf32>
    %415 = arith.subf %414, %412 : vector<8x128xf32>
    %416 = vector.broadcast %86 : f32 to vector<8x128xf32>
    %417 = arith.subf %416, %413 : vector<8x128xf32>
    %418 = arith.mulf %415, %415 : vector<8x128xf32>
    %419 = arith.mulf %417, %417 : vector<8x128xf32>
    %420 = arith.addf %418, %419 : vector<8x128xf32>
    %421 = arith.minimumf %411, %420 : vector<8x128xf32>
    %c1_i32_32 = arith.constant 1 : i32
    %422 = vector.shape_cast %141 : vector<8x128xf32> to vector<1x8x128xf32>
    %cst_33 = arith.constant dense<0x7F800000> : vector<1xf32>
    %423 = vector.multi_reduction <minimumf>, %422, %cst_33 [1, 2] : vector<1x8x128xf32> to vector<1xf32>
    %424 = vector.shape_cast %423 : vector<1xf32> to vector<1x1x1xf32>
    %425 = vector.extract %424[0, 0, 0] : f32 from vector<1x1x1xf32>
    %426 = vector.broadcast %425 : f32 to vector<1x1xf32>
    %c8_i32_34 = arith.constant 8 : i32
    %427 = arith.muli %c0_i32_2, %c8_i32_34 : i32
    %c0_i32_35 = arith.constant 0 : i32
    %428 = arith.addi %427, %c0_i32_35 : i32
    %429 = vector.broadcast %428 : i32 to vector<1x128xi32>
    %430 = arith.cmpi eq, %0, %429 : vector<1x128xi32>
    %431 = vector.shape_cast %426 : vector<1x1xf32> to vector<1x1xf32>
    %432 = vector.broadcast %431 : vector<1x1xf32> to vector<1x128xf32>
    %433 = arith.select %430, %432, %6 : vector<1x128xi1>, vector<1x128xf32>
    %434 = vector.shape_cast %181 : vector<8x128xf32> to vector<1x8x128xf32>
    %cst_36 = arith.constant dense<0x7F800000> : vector<1xf32>
    %435 = vector.multi_reduction <minimumf>, %434, %cst_36 [1, 2] : vector<1x8x128xf32> to vector<1xf32>
    %436 = vector.shape_cast %435 : vector<1xf32> to vector<1x1x1xf32>
    %437 = vector.extract %436[0, 0, 0] : f32 from vector<1x1x1xf32>
    %438 = vector.broadcast %437 : f32 to vector<1x1xf32>
    %c8_i32_37 = arith.constant 8 : i32
    %439 = arith.muli %c0_i32_2, %c8_i32_37 : i32
    %c1_i32_38 = arith.constant 1 : i32
    %440 = arith.addi %439, %c1_i32_38 : i32
    %441 = vector.broadcast %440 : i32 to vector<1x128xi32>
    %442 = arith.cmpi eq, %0, %441 : vector<1x128xi32>
    %443 = vector.shape_cast %438 : vector<1x1xf32> to vector<1x1xf32>
    %444 = vector.broadcast %443 : vector<1x1xf32> to vector<1x128xf32>
    %445 = arith.select %442, %444, %433 : vector<1x128xi1>, vector<1x128xf32>
    %446 = vector.shape_cast %221 : vector<8x128xf32> to vector<1x8x128xf32>
    %cst_39 = arith.constant dense<0x7F800000> : vector<1xf32>
    %447 = vector.multi_reduction <minimumf>, %446, %cst_39 [1, 2] : vector<1x8x128xf32> to vector<1xf32>
    %448 = vector.shape_cast %447 : vector<1xf32> to vector<1x1x1xf32>
    %449 = vector.extract %448[0, 0, 0] : f32 from vector<1x1x1xf32>
    %450 = vector.broadcast %449 : f32 to vector<1x1xf32>
    %c8_i32_40 = arith.constant 8 : i32
    %451 = arith.muli %c0_i32_2, %c8_i32_40 : i32
    %c2_i32_41 = arith.constant 2 : i32
    %452 = arith.addi %451, %c2_i32_41 : i32
    %453 = vector.broadcast %452 : i32 to vector<1x128xi32>
    %454 = arith.cmpi eq, %0, %453 : vector<1x128xi32>
    %455 = vector.shape_cast %450 : vector<1x1xf32> to vector<1x1xf32>
    %456 = vector.broadcast %455 : vector<1x1xf32> to vector<1x128xf32>
    %457 = arith.select %454, %456, %445 : vector<1x128xi1>, vector<1x128xf32>
    %458 = vector.shape_cast %261 : vector<8x128xf32> to vector<1x8x128xf32>
    %cst_42 = arith.constant dense<0x7F800000> : vector<1xf32>
    %459 = vector.multi_reduction <minimumf>, %458, %cst_42 [1, 2] : vector<1x8x128xf32> to vector<1xf32>
    %460 = vector.shape_cast %459 : vector<1xf32> to vector<1x1x1xf32>
    %461 = vector.extract %460[0, 0, 0] : f32 from vector<1x1x1xf32>
    %462 = vector.broadcast %461 : f32 to vector<1x1xf32>
    %c8_i32_43 = arith.constant 8 : i32
    %463 = arith.muli %c0_i32_2, %c8_i32_43 : i32
    %c3_i32_44 = arith.constant 3 : i32
    %464 = arith.addi %463, %c3_i32_44 : i32
    %465 = vector.broadcast %464 : i32 to vector<1x128xi32>
    %466 = arith.cmpi eq, %0, %465 : vector<1x128xi32>
    %467 = vector.shape_cast %462 : vector<1x1xf32> to vector<1x1xf32>
    %468 = vector.broadcast %467 : vector<1x1xf32> to vector<1x128xf32>
    %469 = arith.select %466, %468, %457 : vector<1x128xi1>, vector<1x128xf32>
    %470 = vector.shape_cast %301 : vector<8x128xf32> to vector<1x8x128xf32>
    %cst_45 = arith.constant dense<0x7F800000> : vector<1xf32>
    %471 = vector.multi_reduction <minimumf>, %470, %cst_45 [1, 2] : vector<1x8x128xf32> to vector<1xf32>
    %472 = vector.shape_cast %471 : vector<1xf32> to vector<1x1x1xf32>
    %473 = vector.extract %472[0, 0, 0] : f32 from vector<1x1x1xf32>
    %474 = vector.broadcast %473 : f32 to vector<1x1xf32>
    %c8_i32_46 = arith.constant 8 : i32
    %475 = arith.muli %c0_i32_2, %c8_i32_46 : i32
    %c4_i32_47 = arith.constant 4 : i32
    %476 = arith.addi %475, %c4_i32_47 : i32
    %477 = vector.broadcast %476 : i32 to vector<1x128xi32>
    %478 = arith.cmpi eq, %0, %477 : vector<1x128xi32>
    %479 = vector.shape_cast %474 : vector<1x1xf32> to vector<1x1xf32>
    %480 = vector.broadcast %479 : vector<1x1xf32> to vector<1x128xf32>
    %481 = arith.select %478, %480, %469 : vector<1x128xi1>, vector<1x128xf32>
    %482 = vector.shape_cast %341 : vector<8x128xf32> to vector<1x8x128xf32>
    %cst_48 = arith.constant dense<0x7F800000> : vector<1xf32>
    %483 = vector.multi_reduction <minimumf>, %482, %cst_48 [1, 2] : vector<1x8x128xf32> to vector<1xf32>
    %484 = vector.shape_cast %483 : vector<1xf32> to vector<1x1x1xf32>
    %485 = vector.extract %484[0, 0, 0] : f32 from vector<1x1x1xf32>
    %486 = vector.broadcast %485 : f32 to vector<1x1xf32>
    %c8_i32_49 = arith.constant 8 : i32
    %487 = arith.muli %c0_i32_2, %c8_i32_49 : i32
    %c5_i32_50 = arith.constant 5 : i32
    %488 = arith.addi %487, %c5_i32_50 : i32
    %489 = vector.broadcast %488 : i32 to vector<1x128xi32>
    %490 = arith.cmpi eq, %0, %489 : vector<1x128xi32>
    %491 = vector.shape_cast %486 : vector<1x1xf32> to vector<1x1xf32>
    %492 = vector.broadcast %491 : vector<1x1xf32> to vector<1x128xf32>
    %493 = arith.select %490, %492, %481 : vector<1x128xi1>, vector<1x128xf32>
    %494 = vector.shape_cast %381 : vector<8x128xf32> to vector<1x8x128xf32>
    %cst_51 = arith.constant dense<0x7F800000> : vector<1xf32>
    %495 = vector.multi_reduction <minimumf>, %494, %cst_51 [1, 2] : vector<1x8x128xf32> to vector<1xf32>
    %496 = vector.shape_cast %495 : vector<1xf32> to vector<1x1x1xf32>
    %497 = vector.extract %496[0, 0, 0] : f32 from vector<1x1x1xf32>
    %498 = vector.broadcast %497 : f32 to vector<1x1xf32>
    %c8_i32_52 = arith.constant 8 : i32
    %499 = arith.muli %c0_i32_2, %c8_i32_52 : i32
    %c6_i32_53 = arith.constant 6 : i32
    %500 = arith.addi %499, %c6_i32_53 : i32
    %501 = vector.broadcast %500 : i32 to vector<1x128xi32>
    %502 = arith.cmpi eq, %0, %501 : vector<1x128xi32>
    %503 = vector.shape_cast %498 : vector<1x1xf32> to vector<1x1xf32>
    %504 = vector.broadcast %503 : vector<1x1xf32> to vector<1x128xf32>
    %505 = arith.select %502, %504, %493 : vector<1x128xi1>, vector<1x128xf32>
    %506 = vector.shape_cast %421 : vector<8x128xf32> to vector<1x8x128xf32>
    %cst_54 = arith.constant dense<0x7F800000> : vector<1xf32>
    %507 = vector.multi_reduction <minimumf>, %506, %cst_54 [1, 2] : vector<1x8x128xf32> to vector<1xf32>
    %508 = vector.shape_cast %507 : vector<1xf32> to vector<1x1x1xf32>
    %509 = vector.extract %508[0, 0, 0] : f32 from vector<1x1x1xf32>
    %510 = vector.broadcast %509 : f32 to vector<1x1xf32>
    %c8_i32_55 = arith.constant 8 : i32
    %511 = arith.muli %c0_i32_2, %c8_i32_55 : i32
    %c7_i32_56 = arith.constant 7 : i32
    %512 = arith.addi %511, %c7_i32_56 : i32
    %513 = vector.broadcast %512 : i32 to vector<1x128xi32>
    %514 = arith.cmpi eq, %0, %513 : vector<1x128xi32>
    %515 = vector.shape_cast %510 : vector<1x1xf32> to vector<1x1xf32>
    %516 = vector.broadcast %515 : vector<1x1xf32> to vector<1x128xf32>
    %517 = arith.select %514, %516, %505 : vector<1x128xi1>, vector<1x128xf32>
    %c1_i32_57 = arith.constant 1 : i32
    %cst_58 = arith.constant 0.000000e+00 : f32
    %518 = vector.broadcast %cst_58 : f32 to vector<1x128xf32>
    %519 = arith.maximumf %517, %518 : vector<1x128xf32>
    %520 = math.sqrt %519 : vector<1x128xf32>
    %cst_59 = arith.constant 1.000000e+00 : f32
    %521 = vector.broadcast %cst_59 : f32 to vector<1x128xf32>
    %522 = arith.cmpf ogt, %520, %521 : vector<1x128xf32>
    %cst_60 = arith.constant 1.000000e+00 : f32
    %523 = vector.broadcast %cst_60 : f32 to vector<1x128xf32>
    %524 = arith.subf %523, %520 : vector<1x128xf32>
    %cst_61 = arith.constant 1.000000e+00 : f32
    %525 = vector.broadcast %cst_61 : f32 to vector<1x128xf32>
    %526 = arith.subf %525, %520 : vector<1x128xf32>
    %527 = arith.mulf %524, %526 : vector<1x128xf32>
    %cst_62 = arith.constant 0.000000e+00 : f32
    %528 = vector.broadcast %cst_62 : f32 to vector<1x128xf32>
    %529 = arith.select %522, %528, %527 : vector<1x128xi1>, vector<1x128xf32>
    %cst_63 = arith.constant 1.000000e+01 : f32
    %530 = vector.broadcast %cst_63 : f32 to vector<1x128xf32>
    %531 = arith.mulf %529, %530 : vector<1x128xf32>
    %c8_i32_64 = arith.constant 8 : i32
    %532 = vector.broadcast %c8_i32_64 : i32 to vector<1x128xi32>
    %533 = arith.cmpi slt, %0, %532 : vector<1x128xi32>
    %cst_65 = arith.constant 0.000000e+00 : f32
    %534 = vector.broadcast %cst_65 : f32 to vector<1x128xf32>
    %535 = arith.select %533, %531, %534 : vector<1x128xi1>, vector<1x128xf32>
    %c0_i32_66 = arith.constant 0 : i32
    %536 = vector.broadcast %c0_i32_66 : i32 to vector<2x1xi32>
    %537 = arith.cmpi eq, %1, %536 : vector<2x1xi32>
    %538 = vector.shape_cast %537 : vector<2x1xi1> to vector<2x1xi1>
    %539 = vector.broadcast %538 : vector<2x1xi1> to vector<2x128xi1>
    %540 = vector.shape_cast %535 : vector<1x128xf32> to vector<1x128xf32>
    %541 = vector.broadcast %540 : vector<1x128xf32> to vector<2x128xf32>
    %542 = arith.select %539, %541, %2 : vector<2x128xi1>, vector<2x128xf32>
    %c2_i32_67 = arith.constant 2 : i32
    %543 = arith.muli %arg0, %c2_i32_67 : i32
    %c1_i32_68 = arith.constant 1 : i32
    %544 = arith.addi %543, %c1_i32_68 : i32
    %c8_i32_69 = arith.constant 8 : i32
    %545 = arith.muli %544, %c8_i32_69 : i32
    %cst_70 = arith.constant 0.000000e+00 : f32
    %546 = vector.broadcast %cst_70 : f32 to vector<1x128xf32>
    %cst_71 = arith.constant 1.000000e+30 : f32
    %c0_i32_72 = arith.constant 0 : i32
    %c8_i32_73 = arith.constant 8 : i32
    %547 = arith.muli %c0_i32_72, %c8_i32_73 : i32
    %548 = arith.addi %545, %547 : i32
    %c0_i32_74 = arith.constant 0 : i32
    %549 = arith.addi %548, %c0_i32_74 : i32
    %550 = arith.index_cast %549 : i32 to index
    %551 = memref.load %arg1[%550] : memref<32xf32, #tpu.memory_space<smem>>
    %c8_i32_75 = arith.constant 8 : i32
    %552 = arith.muli %c0_i32_72, %c8_i32_75 : i32
    %553 = arith.addi %545, %552 : i32
    %c1_i32_76 = arith.constant 1 : i32
    %554 = arith.addi %553, %c1_i32_76 : i32
    %555 = arith.index_cast %554 : i32 to index
    %556 = memref.load %arg1[%555] : memref<32xf32, #tpu.memory_space<smem>>
    %c8_i32_77 = arith.constant 8 : i32
    %557 = arith.muli %c0_i32_72, %c8_i32_77 : i32
    %558 = arith.addi %545, %557 : i32
    %c2_i32_78 = arith.constant 2 : i32
    %559 = arith.addi %558, %c2_i32_78 : i32
    %560 = arith.index_cast %559 : i32 to index
    %561 = memref.load %arg1[%560] : memref<32xf32, #tpu.memory_space<smem>>
    %c8_i32_79 = arith.constant 8 : i32
    %562 = arith.muli %c0_i32_72, %c8_i32_79 : i32
    %563 = arith.addi %545, %562 : i32
    %c3_i32_80 = arith.constant 3 : i32
    %564 = arith.addi %563, %c3_i32_80 : i32
    %565 = arith.index_cast %564 : i32 to index
    %566 = memref.load %arg1[%565] : memref<32xf32, #tpu.memory_space<smem>>
    %c8_i32_81 = arith.constant 8 : i32
    %567 = arith.muli %c0_i32_72, %c8_i32_81 : i32
    %568 = arith.addi %545, %567 : i32
    %c4_i32_82 = arith.constant 4 : i32
    %569 = arith.addi %568, %c4_i32_82 : i32
    %570 = arith.index_cast %569 : i32 to index
    %571 = memref.load %arg1[%570] : memref<32xf32, #tpu.memory_space<smem>>
    %c8_i32_83 = arith.constant 8 : i32
    %572 = arith.muli %c0_i32_72, %c8_i32_83 : i32
    %573 = arith.addi %545, %572 : i32
    %c5_i32_84 = arith.constant 5 : i32
    %574 = arith.addi %573, %c5_i32_84 : i32
    %575 = arith.index_cast %574 : i32 to index
    %576 = memref.load %arg1[%575] : memref<32xf32, #tpu.memory_space<smem>>
    %c8_i32_85 = arith.constant 8 : i32
    %577 = arith.muli %c0_i32_72, %c8_i32_85 : i32
    %578 = arith.addi %545, %577 : i32
    %c6_i32_86 = arith.constant 6 : i32
    %579 = arith.addi %578, %c6_i32_86 : i32
    %580 = arith.index_cast %579 : i32 to index
    %581 = memref.load %arg1[%580] : memref<32xf32, #tpu.memory_space<smem>>
    %c8_i32_87 = arith.constant 8 : i32
    %582 = arith.muli %c0_i32_72, %c8_i32_87 : i32
    %583 = arith.addi %545, %582 : i32
    %c7_i32_88 = arith.constant 7 : i32
    %584 = arith.addi %583, %c7_i32_88 : i32
    %585 = arith.index_cast %584 : i32 to index
    %586 = memref.load %arg1[%585] : memref<32xf32, #tpu.memory_space<smem>>
    %c8_i32_89 = arith.constant 8 : i32
    %587 = arith.muli %c0_i32_72, %c8_i32_89 : i32
    %588 = arith.addi %545, %587 : i32
    %c0_i32_90 = arith.constant 0 : i32
    %589 = arith.addi %588, %c0_i32_90 : i32
    %590 = arith.index_cast %589 : i32 to index
    %591 = memref.load %arg2[%590] : memref<32xf32, #tpu.memory_space<smem>>
    %c8_i32_91 = arith.constant 8 : i32
    %592 = arith.muli %c0_i32_72, %c8_i32_91 : i32
    %593 = arith.addi %545, %592 : i32
    %c1_i32_92 = arith.constant 1 : i32
    %594 = arith.addi %593, %c1_i32_92 : i32
    %595 = arith.index_cast %594 : i32 to index
    %596 = memref.load %arg2[%595] : memref<32xf32, #tpu.memory_space<smem>>
    %c8_i32_93 = arith.constant 8 : i32
    %597 = arith.muli %c0_i32_72, %c8_i32_93 : i32
    %598 = arith.addi %545, %597 : i32
    %c2_i32_94 = arith.constant 2 : i32
    %599 = arith.addi %598, %c2_i32_94 : i32
    %600 = arith.index_cast %599 : i32 to index
    %601 = memref.load %arg2[%600] : memref<32xf32, #tpu.memory_space<smem>>
    %c8_i32_95 = arith.constant 8 : i32
    %602 = arith.muli %c0_i32_72, %c8_i32_95 : i32
    %603 = arith.addi %545, %602 : i32
    %c3_i32_96 = arith.constant 3 : i32
    %604 = arith.addi %603, %c3_i32_96 : i32
    %605 = arith.index_cast %604 : i32 to index
    %606 = memref.load %arg2[%605] : memref<32xf32, #tpu.memory_space<smem>>
    %c8_i32_97 = arith.constant 8 : i32
    %607 = arith.muli %c0_i32_72, %c8_i32_97 : i32
    %608 = arith.addi %545, %607 : i32
    %c4_i32_98 = arith.constant 4 : i32
    %609 = arith.addi %608, %c4_i32_98 : i32
    %610 = arith.index_cast %609 : i32 to index
    %611 = memref.load %arg2[%610] : memref<32xf32, #tpu.memory_space<smem>>
    %c8_i32_99 = arith.constant 8 : i32
    %612 = arith.muli %c0_i32_72, %c8_i32_99 : i32
    %613 = arith.addi %545, %612 : i32
    %c5_i32_100 = arith.constant 5 : i32
    %614 = arith.addi %613, %c5_i32_100 : i32
    %615 = arith.index_cast %614 : i32 to index
    %616 = memref.load %arg2[%615] : memref<32xf32, #tpu.memory_space<smem>>
    %c8_i32_101 = arith.constant 8 : i32
    %617 = arith.muli %c0_i32_72, %c8_i32_101 : i32
    %618 = arith.addi %545, %617 : i32
    %c6_i32_102 = arith.constant 6 : i32
    %619 = arith.addi %618, %c6_i32_102 : i32
    %620 = arith.index_cast %619 : i32 to index
    %621 = memref.load %arg2[%620] : memref<32xf32, #tpu.memory_space<smem>>
    %c8_i32_103 = arith.constant 8 : i32
    %622 = arith.muli %c0_i32_72, %c8_i32_103 : i32
    %623 = arith.addi %545, %622 : i32
    %c7_i32_104 = arith.constant 7 : i32
    %624 = arith.addi %623, %c7_i32_104 : i32
    %625 = arith.index_cast %624 : i32 to index
    %626 = memref.load %arg2[%625] : memref<32xf32, #tpu.memory_space<smem>>
    %627 = vector.broadcast %cst_71 : f32 to vector<8x128xf32>
    %628 = vector.broadcast %cst_71 : f32 to vector<8x128xf32>
    %629 = vector.broadcast %cst_71 : f32 to vector<8x128xf32>
    %630 = vector.broadcast %cst_71 : f32 to vector<8x128xf32>
    %631 = vector.broadcast %cst_71 : f32 to vector<8x128xf32>
    %632 = vector.broadcast %cst_71 : f32 to vector<8x128xf32>
    %633 = vector.broadcast %cst_71 : f32 to vector<8x128xf32>
    %634 = vector.broadcast %cst_71 : f32 to vector<8x128xf32>
    %c0_i32_105 = arith.constant 0 : i32
    %c32_i32_106 = arith.constant 32 : i32
    %635 = arith.muli %c0_i32_105, %c32_i32_106 : i32
    %636 = tpu.assume_multiple %635, 32 : i32
    %c1 = arith.constant 1 : index
    %637 = arith.index_cast %636 : i32 to index
    %c0_107 = arith.constant 0 : index
    %638 = vector.load %arg3[%c1, %637, %c0_107] : memref<2x32x128xf32, #tpu.memory_space<vmem>>, vector<1x32x128xf32>
    %639 = vector.shape_cast %638 : vector<1x32x128xf32> to vector<32x128xf32>
    %640 = arith.index_cast %636 : i32 to index
    %c0_108 = arith.constant 0 : index
    %641 = vector.load %arg4[%640, %c0_108] : memref<32x128xf32, #tpu.memory_space<vmem>>, vector<32x128xf32>
    %642 = vector.extract_strided_slice %639 {offsets = [0, 0], sizes = [8, 128], strides = [1, 1]} : vector<32x128xf32> to vector<8x128xf32>
    %643 = vector.extract_strided_slice %641 {offsets = [0, 0], sizes = [8, 128], strides = [1, 1]} : vector<32x128xf32> to vector<8x128xf32>
    %644 = vector.broadcast %551 : f32 to vector<8x128xf32>
    %645 = arith.subf %644, %642 : vector<8x128xf32>
    %646 = vector.broadcast %591 : f32 to vector<8x128xf32>
    %647 = arith.subf %646, %643 : vector<8x128xf32>
    %648 = arith.mulf %645, %645 : vector<8x128xf32>
    %649 = arith.mulf %647, %647 : vector<8x128xf32>
    %650 = arith.addf %648, %649 : vector<8x128xf32>
    %651 = arith.minimumf %627, %650 : vector<8x128xf32>
    %652 = vector.extract_strided_slice %639 {offsets = [8, 0], sizes = [8, 128], strides = [1, 1]} : vector<32x128xf32> to vector<8x128xf32>
    %653 = vector.extract_strided_slice %641 {offsets = [8, 0], sizes = [8, 128], strides = [1, 1]} : vector<32x128xf32> to vector<8x128xf32>
    %654 = vector.broadcast %551 : f32 to vector<8x128xf32>
    %655 = arith.subf %654, %652 : vector<8x128xf32>
    %656 = vector.broadcast %591 : f32 to vector<8x128xf32>
    %657 = arith.subf %656, %653 : vector<8x128xf32>
    %658 = arith.mulf %655, %655 : vector<8x128xf32>
    %659 = arith.mulf %657, %657 : vector<8x128xf32>
    %660 = arith.addf %658, %659 : vector<8x128xf32>
    %661 = arith.minimumf %651, %660 : vector<8x128xf32>
    %662 = vector.extract_strided_slice %639 {offsets = [16, 0], sizes = [8, 128], strides = [1, 1]} : vector<32x128xf32> to vector<8x128xf32>
    %663 = vector.extract_strided_slice %641 {offsets = [16, 0], sizes = [8, 128], strides = [1, 1]} : vector<32x128xf32> to vector<8x128xf32>
    %664 = vector.broadcast %551 : f32 to vector<8x128xf32>
    %665 = arith.subf %664, %662 : vector<8x128xf32>
    %666 = vector.broadcast %591 : f32 to vector<8x128xf32>
    %667 = arith.subf %666, %663 : vector<8x128xf32>
    %668 = arith.mulf %665, %665 : vector<8x128xf32>
    %669 = arith.mulf %667, %667 : vector<8x128xf32>
    %670 = arith.addf %668, %669 : vector<8x128xf32>
    %671 = arith.minimumf %661, %670 : vector<8x128xf32>
    %672 = vector.extract_strided_slice %639 {offsets = [24, 0], sizes = [8, 128], strides = [1, 1]} : vector<32x128xf32> to vector<8x128xf32>
    %673 = vector.extract_strided_slice %641 {offsets = [24, 0], sizes = [8, 128], strides = [1, 1]} : vector<32x128xf32> to vector<8x128xf32>
    %674 = vector.broadcast %551 : f32 to vector<8x128xf32>
    %675 = arith.subf %674, %672 : vector<8x128xf32>
    %676 = vector.broadcast %591 : f32 to vector<8x128xf32>
    %677 = arith.subf %676, %673 : vector<8x128xf32>
    %678 = arith.mulf %675, %675 : vector<8x128xf32>
    %679 = arith.mulf %677, %677 : vector<8x128xf32>
    %680 = arith.addf %678, %679 : vector<8x128xf32>
    %681 = arith.minimumf %671, %680 : vector<8x128xf32>
    %682 = vector.extract_strided_slice %639 {offsets = [0, 0], sizes = [8, 128], strides = [1, 1]} : vector<32x128xf32> to vector<8x128xf32>
    %683 = vector.extract_strided_slice %641 {offsets = [0, 0], sizes = [8, 128], strides = [1, 1]} : vector<32x128xf32> to vector<8x128xf32>
    %684 = vector.broadcast %556 : f32 to vector<8x128xf32>
    %685 = arith.subf %684, %682 : vector<8x128xf32>
    %686 = vector.broadcast %596 : f32 to vector<8x128xf32>
    %687 = arith.subf %686, %683 : vector<8x128xf32>
    %688 = arith.mulf %685, %685 : vector<8x128xf32>
    %689 = arith.mulf %687, %687 : vector<8x128xf32>
    %690 = arith.addf %688, %689 : vector<8x128xf32>
    %691 = arith.minimumf %628, %690 : vector<8x128xf32>
    %692 = vector.extract_strided_slice %639 {offsets = [8, 0], sizes = [8, 128], strides = [1, 1]} : vector<32x128xf32> to vector<8x128xf32>
    %693 = vector.extract_strided_slice %641 {offsets = [8, 0], sizes = [8, 128], strides = [1, 1]} : vector<32x128xf32> to vector<8x128xf32>
    %694 = vector.broadcast %556 : f32 to vector<8x128xf32>
    %695 = arith.subf %694, %692 : vector<8x128xf32>
    %696 = vector.broadcast %596 : f32 to vector<8x128xf32>
    %697 = arith.subf %696, %693 : vector<8x128xf32>
    %698 = arith.mulf %695, %695 : vector<8x128xf32>
    %699 = arith.mulf %697, %697 : vector<8x128xf32>
    %700 = arith.addf %698, %699 : vector<8x128xf32>
    %701 = arith.minimumf %691, %700 : vector<8x128xf32>
    %702 = vector.extract_strided_slice %639 {offsets = [16, 0], sizes = [8, 128], strides = [1, 1]} : vector<32x128xf32> to vector<8x128xf32>
    %703 = vector.extract_strided_slice %641 {offsets = [16, 0], sizes = [8, 128], strides = [1, 1]} : vector<32x128xf32> to vector<8x128xf32>
    %704 = vector.broadcast %556 : f32 to vector<8x128xf32>
    %705 = arith.subf %704, %702 : vector<8x128xf32>
    %706 = vector.broadcast %596 : f32 to vector<8x128xf32>
    %707 = arith.subf %706, %703 : vector<8x128xf32>
    %708 = arith.mulf %705, %705 : vector<8x128xf32>
    %709 = arith.mulf %707, %707 : vector<8x128xf32>
    %710 = arith.addf %708, %709 : vector<8x128xf32>
    %711 = arith.minimumf %701, %710 : vector<8x128xf32>
    %712 = vector.extract_strided_slice %639 {offsets = [24, 0], sizes = [8, 128], strides = [1, 1]} : vector<32x128xf32> to vector<8x128xf32>
    %713 = vector.extract_strided_slice %641 {offsets = [24, 0], sizes = [8, 128], strides = [1, 1]} : vector<32x128xf32> to vector<8x128xf32>
    %714 = vector.broadcast %556 : f32 to vector<8x128xf32>
    %715 = arith.subf %714, %712 : vector<8x128xf32>
    %716 = vector.broadcast %596 : f32 to vector<8x128xf32>
    %717 = arith.subf %716, %713 : vector<8x128xf32>
    %718 = arith.mulf %715, %715 : vector<8x128xf32>
    %719 = arith.mulf %717, %717 : vector<8x128xf32>
    %720 = arith.addf %718, %719 : vector<8x128xf32>
    %721 = arith.minimumf %711, %720 : vector<8x128xf32>
    %722 = vector.extract_strided_slice %639 {offsets = [0, 0], sizes = [8, 128], strides = [1, 1]} : vector<32x128xf32> to vector<8x128xf32>
    %723 = vector.extract_strided_slice %641 {offsets = [0, 0], sizes = [8, 128], strides = [1, 1]} : vector<32x128xf32> to vector<8x128xf32>
    %724 = vector.broadcast %561 : f32 to vector<8x128xf32>
    %725 = arith.subf %724, %722 : vector<8x128xf32>
    %726 = vector.broadcast %601 : f32 to vector<8x128xf32>
    %727 = arith.subf %726, %723 : vector<8x128xf32>
    %728 = arith.mulf %725, %725 : vector<8x128xf32>
    %729 = arith.mulf %727, %727 : vector<8x128xf32>
    %730 = arith.addf %728, %729 : vector<8x128xf32>
    %731 = arith.minimumf %629, %730 : vector<8x128xf32>
    %732 = vector.extract_strided_slice %639 {offsets = [8, 0], sizes = [8, 128], strides = [1, 1]} : vector<32x128xf32> to vector<8x128xf32>
    %733 = vector.extract_strided_slice %641 {offsets = [8, 0], sizes = [8, 128], strides = [1, 1]} : vector<32x128xf32> to vector<8x128xf32>
    %734 = vector.broadcast %561 : f32 to vector<8x128xf32>
    %735 = arith.subf %734, %732 : vector<8x128xf32>
    %736 = vector.broadcast %601 : f32 to vector<8x128xf32>
    %737 = arith.subf %736, %733 : vector<8x128xf32>
    %738 = arith.mulf %735, %735 : vector<8x128xf32>
    %739 = arith.mulf %737, %737 : vector<8x128xf32>
    %740 = arith.addf %738, %739 : vector<8x128xf32>
    %741 = arith.minimumf %731, %740 : vector<8x128xf32>
    %742 = vector.extract_strided_slice %639 {offsets = [16, 0], sizes = [8, 128], strides = [1, 1]} : vector<32x128xf32> to vector<8x128xf32>
    %743 = vector.extract_strided_slice %641 {offsets = [16, 0], sizes = [8, 128], strides = [1, 1]} : vector<32x128xf32> to vector<8x128xf32>
    %744 = vector.broadcast %561 : f32 to vector<8x128xf32>
    %745 = arith.subf %744, %742 : vector<8x128xf32>
    %746 = vector.broadcast %601 : f32 to vector<8x128xf32>
    %747 = arith.subf %746, %743 : vector<8x128xf32>
    %748 = arith.mulf %745, %745 : vector<8x128xf32>
    %749 = arith.mulf %747, %747 : vector<8x128xf32>
    %750 = arith.addf %748, %749 : vector<8x128xf32>
    %751 = arith.minimumf %741, %750 : vector<8x128xf32>
    %752 = vector.extract_strided_slice %639 {offsets = [24, 0], sizes = [8, 128], strides = [1, 1]} : vector<32x128xf32> to vector<8x128xf32>
    %753 = vector.extract_strided_slice %641 {offsets = [24, 0], sizes = [8, 128], strides = [1, 1]} : vector<32x128xf32> to vector<8x128xf32>
    %754 = vector.broadcast %561 : f32 to vector<8x128xf32>
    %755 = arith.subf %754, %752 : vector<8x128xf32>
    %756 = vector.broadcast %601 : f32 to vector<8x128xf32>
    %757 = arith.subf %756, %753 : vector<8x128xf32>
    %758 = arith.mulf %755, %755 : vector<8x128xf32>
    %759 = arith.mulf %757, %757 : vector<8x128xf32>
    %760 = arith.addf %758, %759 : vector<8x128xf32>
    %761 = arith.minimumf %751, %760 : vector<8x128xf32>
    %762 = vector.extract_strided_slice %639 {offsets = [0, 0], sizes = [8, 128], strides = [1, 1]} : vector<32x128xf32> to vector<8x128xf32>
    %763 = vector.extract_strided_slice %641 {offsets = [0, 0], sizes = [8, 128], strides = [1, 1]} : vector<32x128xf32> to vector<8x128xf32>
    %764 = vector.broadcast %566 : f32 to vector<8x128xf32>
    %765 = arith.subf %764, %762 : vector<8x128xf32>
    %766 = vector.broadcast %606 : f32 to vector<8x128xf32>
    %767 = arith.subf %766, %763 : vector<8x128xf32>
    %768 = arith.mulf %765, %765 : vector<8x128xf32>
    %769 = arith.mulf %767, %767 : vector<8x128xf32>
    %770 = arith.addf %768, %769 : vector<8x128xf32>
    %771 = arith.minimumf %630, %770 : vector<8x128xf32>
    %772 = vector.extract_strided_slice %639 {offsets = [8, 0], sizes = [8, 128], strides = [1, 1]} : vector<32x128xf32> to vector<8x128xf32>
    %773 = vector.extract_strided_slice %641 {offsets = [8, 0], sizes = [8, 128], strides = [1, 1]} : vector<32x128xf32> to vector<8x128xf32>
    %774 = vector.broadcast %566 : f32 to vector<8x128xf32>
    %775 = arith.subf %774, %772 : vector<8x128xf32>
    %776 = vector.broadcast %606 : f32 to vector<8x128xf32>
    %777 = arith.subf %776, %773 : vector<8x128xf32>
    %778 = arith.mulf %775, %775 : vector<8x128xf32>
    %779 = arith.mulf %777, %777 : vector<8x128xf32>
    %780 = arith.addf %778, %779 : vector<8x128xf32>
    %781 = arith.minimumf %771, %780 : vector<8x128xf32>
    %782 = vector.extract_strided_slice %639 {offsets = [16, 0], sizes = [8, 128], strides = [1, 1]} : vector<32x128xf32> to vector<8x128xf32>
    %783 = vector.extract_strided_slice %641 {offsets = [16, 0], sizes = [8, 128], strides = [1, 1]} : vector<32x128xf32> to vector<8x128xf32>
    %784 = vector.broadcast %566 : f32 to vector<8x128xf32>
    %785 = arith.subf %784, %782 : vector<8x128xf32>
    %786 = vector.broadcast %606 : f32 to vector<8x128xf32>
    %787 = arith.subf %786, %783 : vector<8x128xf32>
    %788 = arith.mulf %785, %785 : vector<8x128xf32>
    %789 = arith.mulf %787, %787 : vector<8x128xf32>
    %790 = arith.addf %788, %789 : vector<8x128xf32>
    %791 = arith.minimumf %781, %790 : vector<8x128xf32>
    %792 = vector.extract_strided_slice %639 {offsets = [24, 0], sizes = [8, 128], strides = [1, 1]} : vector<32x128xf32> to vector<8x128xf32>
    %793 = vector.extract_strided_slice %641 {offsets = [24, 0], sizes = [8, 128], strides = [1, 1]} : vector<32x128xf32> to vector<8x128xf32>
    %794 = vector.broadcast %566 : f32 to vector<8x128xf32>
    %795 = arith.subf %794, %792 : vector<8x128xf32>
    %796 = vector.broadcast %606 : f32 to vector<8x128xf32>
    %797 = arith.subf %796, %793 : vector<8x128xf32>
    %798 = arith.mulf %795, %795 : vector<8x128xf32>
    %799 = arith.mulf %797, %797 : vector<8x128xf32>
    %800 = arith.addf %798, %799 : vector<8x128xf32>
    %801 = arith.minimumf %791, %800 : vector<8x128xf32>
    %802 = vector.extract_strided_slice %639 {offsets = [0, 0], sizes = [8, 128], strides = [1, 1]} : vector<32x128xf32> to vector<8x128xf32>
    %803 = vector.extract_strided_slice %641 {offsets = [0, 0], sizes = [8, 128], strides = [1, 1]} : vector<32x128xf32> to vector<8x128xf32>
    %804 = vector.broadcast %571 : f32 to vector<8x128xf32>
    %805 = arith.subf %804, %802 : vector<8x128xf32>
    %806 = vector.broadcast %611 : f32 to vector<8x128xf32>
    %807 = arith.subf %806, %803 : vector<8x128xf32>
    %808 = arith.mulf %805, %805 : vector<8x128xf32>
    %809 = arith.mulf %807, %807 : vector<8x128xf32>
    %810 = arith.addf %808, %809 : vector<8x128xf32>
    %811 = arith.minimumf %631, %810 : vector<8x128xf32>
    %812 = vector.extract_strided_slice %639 {offsets = [8, 0], sizes = [8, 128], strides = [1, 1]} : vector<32x128xf32> to vector<8x128xf32>
    %813 = vector.extract_strided_slice %641 {offsets = [8, 0], sizes = [8, 128], strides = [1, 1]} : vector<32x128xf32> to vector<8x128xf32>
    %814 = vector.broadcast %571 : f32 to vector<8x128xf32>
    %815 = arith.subf %814, %812 : vector<8x128xf32>
    %816 = vector.broadcast %611 : f32 to vector<8x128xf32>
    %817 = arith.subf %816, %813 : vector<8x128xf32>
    %818 = arith.mulf %815, %815 : vector<8x128xf32>
    %819 = arith.mulf %817, %817 : vector<8x128xf32>
    %820 = arith.addf %818, %819 : vector<8x128xf32>
    %821 = arith.minimumf %811, %820 : vector<8x128xf32>
    %822 = vector.extract_strided_slice %639 {offsets = [16, 0], sizes = [8, 128], strides = [1, 1]} : vector<32x128xf32> to vector<8x128xf32>
    %823 = vector.extract_strided_slice %641 {offsets = [16, 0], sizes = [8, 128], strides = [1, 1]} : vector<32x128xf32> to vector<8x128xf32>
    %824 = vector.broadcast %571 : f32 to vector<8x128xf32>
    %825 = arith.subf %824, %822 : vector<8x128xf32>
    %826 = vector.broadcast %611 : f32 to vector<8x128xf32>
    %827 = arith.subf %826, %823 : vector<8x128xf32>
    %828 = arith.mulf %825, %825 : vector<8x128xf32>
    %829 = arith.mulf %827, %827 : vector<8x128xf32>
    %830 = arith.addf %828, %829 : vector<8x128xf32>
    %831 = arith.minimumf %821, %830 : vector<8x128xf32>
    %832 = vector.extract_strided_slice %639 {offsets = [24, 0], sizes = [8, 128], strides = [1, 1]} : vector<32x128xf32> to vector<8x128xf32>
    %833 = vector.extract_strided_slice %641 {offsets = [24, 0], sizes = [8, 128], strides = [1, 1]} : vector<32x128xf32> to vector<8x128xf32>
    %834 = vector.broadcast %571 : f32 to vector<8x128xf32>
    %835 = arith.subf %834, %832 : vector<8x128xf32>
    %836 = vector.broadcast %611 : f32 to vector<8x128xf32>
    %837 = arith.subf %836, %833 : vector<8x128xf32>
    %838 = arith.mulf %835, %835 : vector<8x128xf32>
    %839 = arith.mulf %837, %837 : vector<8x128xf32>
    %840 = arith.addf %838, %839 : vector<8x128xf32>
    %841 = arith.minimumf %831, %840 : vector<8x128xf32>
    %842 = vector.extract_strided_slice %639 {offsets = [0, 0], sizes = [8, 128], strides = [1, 1]} : vector<32x128xf32> to vector<8x128xf32>
    %843 = vector.extract_strided_slice %641 {offsets = [0, 0], sizes = [8, 128], strides = [1, 1]} : vector<32x128xf32> to vector<8x128xf32>
    %844 = vector.broadcast %576 : f32 to vector<8x128xf32>
    %845 = arith.subf %844, %842 : vector<8x128xf32>
    %846 = vector.broadcast %616 : f32 to vector<8x128xf32>
    %847 = arith.subf %846, %843 : vector<8x128xf32>
    %848 = arith.mulf %845, %845 : vector<8x128xf32>
    %849 = arith.mulf %847, %847 : vector<8x128xf32>
    %850 = arith.addf %848, %849 : vector<8x128xf32>
    %851 = arith.minimumf %632, %850 : vector<8x128xf32>
    %852 = vector.extract_strided_slice %639 {offsets = [8, 0], sizes = [8, 128], strides = [1, 1]} : vector<32x128xf32> to vector<8x128xf32>
    %853 = vector.extract_strided_slice %641 {offsets = [8, 0], sizes = [8, 128], strides = [1, 1]} : vector<32x128xf32> to vector<8x128xf32>
    %854 = vector.broadcast %576 : f32 to vector<8x128xf32>
    %855 = arith.subf %854, %852 : vector<8x128xf32>
    %856 = vector.broadcast %616 : f32 to vector<8x128xf32>
    %857 = arith.subf %856, %853 : vector<8x128xf32>
    %858 = arith.mulf %855, %855 : vector<8x128xf32>
    %859 = arith.mulf %857, %857 : vector<8x128xf32>
    %860 = arith.addf %858, %859 : vector<8x128xf32>
    %861 = arith.minimumf %851, %860 : vector<8x128xf32>
    %862 = vector.extract_strided_slice %639 {offsets = [16, 0], sizes = [8, 128], strides = [1, 1]} : vector<32x128xf32> to vector<8x128xf32>
    %863 = vector.extract_strided_slice %641 {offsets = [16, 0], sizes = [8, 128], strides = [1, 1]} : vector<32x128xf32> to vector<8x128xf32>
    %864 = vector.broadcast %576 : f32 to vector<8x128xf32>
    %865 = arith.subf %864, %862 : vector<8x128xf32>
    %866 = vector.broadcast %616 : f32 to vector<8x128xf32>
    %867 = arith.subf %866, %863 : vector<8x128xf32>
    %868 = arith.mulf %865, %865 : vector<8x128xf32>
    %869 = arith.mulf %867, %867 : vector<8x128xf32>
    %870 = arith.addf %868, %869 : vector<8x128xf32>
    %871 = arith.minimumf %861, %870 : vector<8x128xf32>
    %872 = vector.extract_strided_slice %639 {offsets = [24, 0], sizes = [8, 128], strides = [1, 1]} : vector<32x128xf32> to vector<8x128xf32>
    %873 = vector.extract_strided_slice %641 {offsets = [24, 0], sizes = [8, 128], strides = [1, 1]} : vector<32x128xf32> to vector<8x128xf32>
    %874 = vector.broadcast %576 : f32 to vector<8x128xf32>
    %875 = arith.subf %874, %872 : vector<8x128xf32>
    %876 = vector.broadcast %616 : f32 to vector<8x128xf32>
    %877 = arith.subf %876, %873 : vector<8x128xf32>
    %878 = arith.mulf %875, %875 : vector<8x128xf32>
    %879 = arith.mulf %877, %877 : vector<8x128xf32>
    %880 = arith.addf %878, %879 : vector<8x128xf32>
    %881 = arith.minimumf %871, %880 : vector<8x128xf32>
    %882 = vector.extract_strided_slice %639 {offsets = [0, 0], sizes = [8, 128], strides = [1, 1]} : vector<32x128xf32> to vector<8x128xf32>
    %883 = vector.extract_strided_slice %641 {offsets = [0, 0], sizes = [8, 128], strides = [1, 1]} : vector<32x128xf32> to vector<8x128xf32>
    %884 = vector.broadcast %581 : f32 to vector<8x128xf32>
    %885 = arith.subf %884, %882 : vector<8x128xf32>
    %886 = vector.broadcast %621 : f32 to vector<8x128xf32>
    %887 = arith.subf %886, %883 : vector<8x128xf32>
    %888 = arith.mulf %885, %885 : vector<8x128xf32>
    %889 = arith.mulf %887, %887 : vector<8x128xf32>
    %890 = arith.addf %888, %889 : vector<8x128xf32>
    %891 = arith.minimumf %633, %890 : vector<8x128xf32>
    %892 = vector.extract_strided_slice %639 {offsets = [8, 0], sizes = [8, 128], strides = [1, 1]} : vector<32x128xf32> to vector<8x128xf32>
    %893 = vector.extract_strided_slice %641 {offsets = [8, 0], sizes = [8, 128], strides = [1, 1]} : vector<32x128xf32> to vector<8x128xf32>
    %894 = vector.broadcast %581 : f32 to vector<8x128xf32>
    %895 = arith.subf %894, %892 : vector<8x128xf32>
    %896 = vector.broadcast %621 : f32 to vector<8x128xf32>
    %897 = arith.subf %896, %893 : vector<8x128xf32>
    %898 = arith.mulf %895, %895 : vector<8x128xf32>
    %899 = arith.mulf %897, %897 : vector<8x128xf32>
    %900 = arith.addf %898, %899 : vector<8x128xf32>
    %901 = arith.minimumf %891, %900 : vector<8x128xf32>
    %902 = vector.extract_strided_slice %639 {offsets = [16, 0], sizes = [8, 128], strides = [1, 1]} : vector<32x128xf32> to vector<8x128xf32>
    %903 = vector.extract_strided_slice %641 {offsets = [16, 0], sizes = [8, 128], strides = [1, 1]} : vector<32x128xf32> to vector<8x128xf32>
    %904 = vector.broadcast %581 : f32 to vector<8x128xf32>
    %905 = arith.subf %904, %902 : vector<8x128xf32>
    %906 = vector.broadcast %621 : f32 to vector<8x128xf32>
    %907 = arith.subf %906, %903 : vector<8x128xf32>
    %908 = arith.mulf %905, %905 : vector<8x128xf32>
    %909 = arith.mulf %907, %907 : vector<8x128xf32>
    %910 = arith.addf %908, %909 : vector<8x128xf32>
    %911 = arith.minimumf %901, %910 : vector<8x128xf32>
    %912 = vector.extract_strided_slice %639 {offsets = [24, 0], sizes = [8, 128], strides = [1, 1]} : vector<32x128xf32> to vector<8x128xf32>
    %913 = vector.extract_strided_slice %641 {offsets = [24, 0], sizes = [8, 128], strides = [1, 1]} : vector<32x128xf32> to vector<8x128xf32>
    %914 = vector.broadcast %581 : f32 to vector<8x128xf32>
    %915 = arith.subf %914, %912 : vector<8x128xf32>
    %916 = vector.broadcast %621 : f32 to vector<8x128xf32>
    %917 = arith.subf %916, %913 : vector<8x128xf32>
    %918 = arith.mulf %915, %915 : vector<8x128xf32>
    %919 = arith.mulf %917, %917 : vector<8x128xf32>
    %920 = arith.addf %918, %919 : vector<8x128xf32>
    %921 = arith.minimumf %911, %920 : vector<8x128xf32>
    %922 = vector.extract_strided_slice %639 {offsets = [0, 0], sizes = [8, 128], strides = [1, 1]} : vector<32x128xf32> to vector<8x128xf32>
    %923 = vector.extract_strided_slice %641 {offsets = [0, 0], sizes = [8, 128], strides = [1, 1]} : vector<32x128xf32> to vector<8x128xf32>
    %924 = vector.broadcast %586 : f32 to vector<8x128xf32>
    %925 = arith.subf %924, %922 : vector<8x128xf32>
    %926 = vector.broadcast %626 : f32 to vector<8x128xf32>
    %927 = arith.subf %926, %923 : vector<8x128xf32>
    %928 = arith.mulf %925, %925 : vector<8x128xf32>
    %929 = arith.mulf %927, %927 : vector<8x128xf32>
    %930 = arith.addf %928, %929 : vector<8x128xf32>
    %931 = arith.minimumf %634, %930 : vector<8x128xf32>
    %932 = vector.extract_strided_slice %639 {offsets = [8, 0], sizes = [8, 128], strides = [1, 1]} : vector<32x128xf32> to vector<8x128xf32>
    %933 = vector.extract_strided_slice %641 {offsets = [8, 0], sizes = [8, 128], strides = [1, 1]} : vector<32x128xf32> to vector<8x128xf32>
    %934 = vector.broadcast %586 : f32 to vector<8x128xf32>
    %935 = arith.subf %934, %932 : vector<8x128xf32>
    %936 = vector.broadcast %626 : f32 to vector<8x128xf32>
    %937 = arith.subf %936, %933 : vector<8x128xf32>
    %938 = arith.mulf %935, %935 : vector<8x128xf32>
    %939 = arith.mulf %937, %937 : vector<8x128xf32>
    %940 = arith.addf %938, %939 : vector<8x128xf32>
    %941 = arith.minimumf %931, %940 : vector<8x128xf32>
    %942 = vector.extract_strided_slice %639 {offsets = [16, 0], sizes = [8, 128], strides = [1, 1]} : vector<32x128xf32> to vector<8x128xf32>
    %943 = vector.extract_strided_slice %641 {offsets = [16, 0], sizes = [8, 128], strides = [1, 1]} : vector<32x128xf32> to vector<8x128xf32>
    %944 = vector.broadcast %586 : f32 to vector<8x128xf32>
    %945 = arith.subf %944, %942 : vector<8x128xf32>
    %946 = vector.broadcast %626 : f32 to vector<8x128xf32>
    %947 = arith.subf %946, %943 : vector<8x128xf32>
    %948 = arith.mulf %945, %945 : vector<8x128xf32>
    %949 = arith.mulf %947, %947 : vector<8x128xf32>
    %950 = arith.addf %948, %949 : vector<8x128xf32>
    %951 = arith.minimumf %941, %950 : vector<8x128xf32>
    %952 = vector.extract_strided_slice %639 {offsets = [24, 0], sizes = [8, 128], strides = [1, 1]} : vector<32x128xf32> to vector<8x128xf32>
    %953 = vector.extract_strided_slice %641 {offsets = [24, 0], sizes = [8, 128], strides = [1, 1]} : vector<32x128xf32> to vector<8x128xf32>
    %954 = vector.broadcast %586 : f32 to vector<8x128xf32>
    %955 = arith.subf %954, %952 : vector<8x128xf32>
    %956 = vector.broadcast %626 : f32 to vector<8x128xf32>
    %957 = arith.subf %956, %953 : vector<8x128xf32>
    %958 = arith.mulf %955, %955 : vector<8x128xf32>
    %959 = arith.mulf %957, %957 : vector<8x128xf32>
    %960 = arith.addf %958, %959 : vector<8x128xf32>
    %961 = arith.minimumf %951, %960 : vector<8x128xf32>
    %c1_i32_109 = arith.constant 1 : i32
    %962 = vector.shape_cast %681 : vector<8x128xf32> to vector<1x8x128xf32>
    %cst_110 = arith.constant dense<0x7F800000> : vector<1xf32>
    %963 = vector.multi_reduction <minimumf>, %962, %cst_110 [1, 2] : vector<1x8x128xf32> to vector<1xf32>
    %964 = vector.shape_cast %963 : vector<1xf32> to vector<1x1x1xf32>
    %965 = vector.extract %964[0, 0, 0] : f32 from vector<1x1x1xf32>
    %966 = vector.broadcast %965 : f32 to vector<1x1xf32>
    %c8_i32_111 = arith.constant 8 : i32
    %967 = arith.muli %c0_i32_72, %c8_i32_111 : i32
    %c0_i32_112 = arith.constant 0 : i32
    %968 = arith.addi %967, %c0_i32_112 : i32
    %969 = vector.broadcast %968 : i32 to vector<1x128xi32>
    %970 = arith.cmpi eq, %0, %969 : vector<1x128xi32>
    %971 = vector.shape_cast %966 : vector<1x1xf32> to vector<1x1xf32>
    %972 = vector.broadcast %971 : vector<1x1xf32> to vector<1x128xf32>
    %973 = arith.select %970, %972, %546 : vector<1x128xi1>, vector<1x128xf32>
    %974 = vector.shape_cast %721 : vector<8x128xf32> to vector<1x8x128xf32>
    %cst_113 = arith.constant dense<0x7F800000> : vector<1xf32>
    %975 = vector.multi_reduction <minimumf>, %974, %cst_113 [1, 2] : vector<1x8x128xf32> to vector<1xf32>
    %976 = vector.shape_cast %975 : vector<1xf32> to vector<1x1x1xf32>
    %977 = vector.extract %976[0, 0, 0] : f32 from vector<1x1x1xf32>
    %978 = vector.broadcast %977 : f32 to vector<1x1xf32>
    %c8_i32_114 = arith.constant 8 : i32
    %979 = arith.muli %c0_i32_72, %c8_i32_114 : i32
    %c1_i32_115 = arith.constant 1 : i32
    %980 = arith.addi %979, %c1_i32_115 : i32
    %981 = vector.broadcast %980 : i32 to vector<1x128xi32>
    %982 = arith.cmpi eq, %0, %981 : vector<1x128xi32>
    %983 = vector.shape_cast %978 : vector<1x1xf32> to vector<1x1xf32>
    %984 = vector.broadcast %983 : vector<1x1xf32> to vector<1x128xf32>
    %985 = arith.select %982, %984, %973 : vector<1x128xi1>, vector<1x128xf32>
    %986 = vector.shape_cast %761 : vector<8x128xf32> to vector<1x8x128xf32>
    %cst_116 = arith.constant dense<0x7F800000> : vector<1xf32>
    %987 = vector.multi_reduction <minimumf>, %986, %cst_116 [1, 2] : vector<1x8x128xf32> to vector<1xf32>
    %988 = vector.shape_cast %987 : vector<1xf32> to vector<1x1x1xf32>
    %989 = vector.extract %988[0, 0, 0] : f32 from vector<1x1x1xf32>
    %990 = vector.broadcast %989 : f32 to vector<1x1xf32>
    %c8_i32_117 = arith.constant 8 : i32
    %991 = arith.muli %c0_i32_72, %c8_i32_117 : i32
    %c2_i32_118 = arith.constant 2 : i32
    %992 = arith.addi %991, %c2_i32_118 : i32
    %993 = vector.broadcast %992 : i32 to vector<1x128xi32>
    %994 = arith.cmpi eq, %0, %993 : vector<1x128xi32>
    %995 = vector.shape_cast %990 : vector<1x1xf32> to vector<1x1xf32>
    %996 = vector.broadcast %995 : vector<1x1xf32> to vector<1x128xf32>
    %997 = arith.select %994, %996, %985 : vector<1x128xi1>, vector<1x128xf32>
    %998 = vector.shape_cast %801 : vector<8x128xf32> to vector<1x8x128xf32>
    %cst_119 = arith.constant dense<0x7F800000> : vector<1xf32>
    %999 = vector.multi_reduction <minimumf>, %998, %cst_119 [1, 2] : vector<1x8x128xf32> to vector<1xf32>
    %1000 = vector.shape_cast %999 : vector<1xf32> to vector<1x1x1xf32>
    %1001 = vector.extract %1000[0, 0, 0] : f32 from vector<1x1x1xf32>
    %1002 = vector.broadcast %1001 : f32 to vector<1x1xf32>
    %c8_i32_120 = arith.constant 8 : i32
    %1003 = arith.muli %c0_i32_72, %c8_i32_120 : i32
    %c3_i32_121 = arith.constant 3 : i32
    %1004 = arith.addi %1003, %c3_i32_121 : i32
    %1005 = vector.broadcast %1004 : i32 to vector<1x128xi32>
    %1006 = arith.cmpi eq, %0, %1005 : vector<1x128xi32>
    %1007 = vector.shape_cast %1002 : vector<1x1xf32> to vector<1x1xf32>
    %1008 = vector.broadcast %1007 : vector<1x1xf32> to vector<1x128xf32>
    %1009 = arith.select %1006, %1008, %997 : vector<1x128xi1>, vector<1x128xf32>
    %1010 = vector.shape_cast %841 : vector<8x128xf32> to vector<1x8x128xf32>
    %cst_122 = arith.constant dense<0x7F800000> : vector<1xf32>
    %1011 = vector.multi_reduction <minimumf>, %1010, %cst_122 [1, 2] : vector<1x8x128xf32> to vector<1xf32>
    %1012 = vector.shape_cast %1011 : vector<1xf32> to vector<1x1x1xf32>
    %1013 = vector.extract %1012[0, 0, 0] : f32 from vector<1x1x1xf32>
    %1014 = vector.broadcast %1013 : f32 to vector<1x1xf32>
    %c8_i32_123 = arith.constant 8 : i32
    %1015 = arith.muli %c0_i32_72, %c8_i32_123 : i32
    %c4_i32_124 = arith.constant 4 : i32
    %1016 = arith.addi %1015, %c4_i32_124 : i32
    %1017 = vector.broadcast %1016 : i32 to vector<1x128xi32>
    %1018 = arith.cmpi eq, %0, %1017 : vector<1x128xi32>
    %1019 = vector.shape_cast %1014 : vector<1x1xf32> to vector<1x1xf32>
    %1020 = vector.broadcast %1019 : vector<1x1xf32> to vector<1x128xf32>
    %1021 = arith.select %1018, %1020, %1009 : vector<1x128xi1>, vector<1x128xf32>
    %1022 = vector.shape_cast %881 : vector<8x128xf32> to vector<1x8x128xf32>
    %cst_125 = arith.constant dense<0x7F800000> : vector<1xf32>
    %1023 = vector.multi_reduction <minimumf>, %1022, %cst_125 [1, 2] : vector<1x8x128xf32> to vector<1xf32>
    %1024 = vector.shape_cast %1023 : vector<1xf32> to vector<1x1x1xf32>
    %1025 = vector.extract %1024[0, 0, 0] : f32 from vector<1x1x1xf32>
    %1026 = vector.broadcast %1025 : f32 to vector<1x1xf32>
    %c8_i32_126 = arith.constant 8 : i32
    %1027 = arith.muli %c0_i32_72, %c8_i32_126 : i32
    %c5_i32_127 = arith.constant 5 : i32
    %1028 = arith.addi %1027, %c5_i32_127 : i32
    %1029 = vector.broadcast %1028 : i32 to vector<1x128xi32>
    %1030 = arith.cmpi eq, %0, %1029 : vector<1x128xi32>
    %1031 = vector.shape_cast %1026 : vector<1x1xf32> to vector<1x1xf32>
    %1032 = vector.broadcast %1031 : vector<1x1xf32> to vector<1x128xf32>
    %1033 = arith.select %1030, %1032, %1021 : vector<1x128xi1>, vector<1x128xf32>
    %1034 = vector.shape_cast %921 : vector<8x128xf32> to vector<1x8x128xf32>
    %cst_128 = arith.constant dense<0x7F800000> : vector<1xf32>
    %1035 = vector.multi_reduction <minimumf>, %1034, %cst_128 [1, 2] : vector<1x8x128xf32> to vector<1xf32>
    %1036 = vector.shape_cast %1035 : vector<1xf32> to vector<1x1x1xf32>
    %1037 = vector.extract %1036[0, 0, 0] : f32 from vector<1x1x1xf32>
    %1038 = vector.broadcast %1037 : f32 to vector<1x1xf32>
    %c8_i32_129 = arith.constant 8 : i32
    %1039 = arith.muli %c0_i32_72, %c8_i32_129 : i32
    %c6_i32_130 = arith.constant 6 : i32
    %1040 = arith.addi %1039, %c6_i32_130 : i32
    %1041 = vector.broadcast %1040 : i32 to vector<1x128xi32>
    %1042 = arith.cmpi eq, %0, %1041 : vector<1x128xi32>
    %1043 = vector.shape_cast %1038 : vector<1x1xf32> to vector<1x1xf32>
    %1044 = vector.broadcast %1043 : vector<1x1xf32> to vector<1x128xf32>
    %1045 = arith.select %1042, %1044, %1033 : vector<1x128xi1>, vector<1x128xf32>
    %1046 = vector.shape_cast %961 : vector<8x128xf32> to vector<1x8x128xf32>
    %cst_131 = arith.constant dense<0x7F800000> : vector<1xf32>
    %1047 = vector.multi_reduction <minimumf>, %1046, %cst_131 [1, 2] : vector<1x8x128xf32> to vector<1xf32>
    %1048 = vector.shape_cast %1047 : vector<1xf32> to vector<1x1x1xf32>
    %1049 = vector.extract %1048[0, 0, 0] : f32 from vector<1x1x1xf32>
    %1050 = vector.broadcast %1049 : f32 to vector<1x1xf32>
    %c8_i32_132 = arith.constant 8 : i32
    %1051 = arith.muli %c0_i32_72, %c8_i32_132 : i32
    %c7_i32_133 = arith.constant 7 : i32
    %1052 = arith.addi %1051, %c7_i32_133 : i32
    %1053 = vector.broadcast %1052 : i32 to vector<1x128xi32>
    %1054 = arith.cmpi eq, %0, %1053 : vector<1x128xi32>
    %1055 = vector.shape_cast %1050 : vector<1x1xf32> to vector<1x1xf32>
    %1056 = vector.broadcast %1055 : vector<1x1xf32> to vector<1x128xf32>
    %1057 = arith.select %1054, %1056, %1045 : vector<1x128xi1>, vector<1x128xf32>
    %c1_i32_134 = arith.constant 1 : i32
    %cst_135 = arith.constant 0.000000e+00 : f32
    %1058 = vector.broadcast %cst_135 : f32 to vector<1x128xf32>
    %1059 = arith.maximumf %1057, %1058 : vector<1x128xf32>
    %1060 = math.sqrt %1059 : vector<1x128xf32>
    %cst_136 = arith.constant 1.000000e+00 : f32
    %1061 = vector.broadcast %cst_136 : f32 to vector<1x128xf32>
    %1062 = arith.cmpf ogt, %1060, %1061 : vector<1x128xf32>
    %cst_137 = arith.constant 1.000000e+00 : f32
    %1063 = vector.broadcast %cst_137 : f32 to vector<1x128xf32>
    %1064 = arith.subf %1063, %1060 : vector<1x128xf32>
    %cst_138 = arith.constant 1.000000e+00 : f32
    %1065 = vector.broadcast %cst_138 : f32 to vector<1x128xf32>
    %1066 = arith.subf %1065, %1060 : vector<1x128xf32>
    %1067 = arith.mulf %1064, %1066 : vector<1x128xf32>
    %cst_139 = arith.constant 0.000000e+00 : f32
    %1068 = vector.broadcast %cst_139 : f32 to vector<1x128xf32>
    %1069 = arith.select %1062, %1068, %1067 : vector<1x128xi1>, vector<1x128xf32>
    %cst_140 = arith.constant 1.000000e+01 : f32
    %1070 = vector.broadcast %cst_140 : f32 to vector<1x128xf32>
    %1071 = arith.mulf %1069, %1070 : vector<1x128xf32>
    %c8_i32_141 = arith.constant 8 : i32
    %1072 = vector.broadcast %c8_i32_141 : i32 to vector<1x128xi32>
    %1073 = arith.cmpi slt, %0, %1072 : vector<1x128xi32>
    %cst_142 = arith.constant 0.000000e+00 : f32
    %1074 = vector.broadcast %cst_142 : f32 to vector<1x128xf32>
    %1075 = arith.select %1073, %1071, %1074 : vector<1x128xi1>, vector<1x128xf32>
    %c1_i32_143 = arith.constant 1 : i32
    %1076 = vector.broadcast %c1_i32_143 : i32 to vector<2x1xi32>
    %1077 = arith.cmpi eq, %1, %1076 : vector<2x1xi32>
    %1078 = vector.shape_cast %1077 : vector<2x1xi1> to vector<2x1xi1>
    %1079 = vector.broadcast %1078 : vector<2x1xi1> to vector<2x128xi1>
    %1080 = vector.shape_cast %1075 : vector<1x128xf32> to vector<1x128xf32>
    %1081 = vector.broadcast %1080 : vector<1x128xf32> to vector<2x128xf32>
    %1082 = arith.select %1079, %1081, %542 : vector<2x128xi1>, vector<2x128xf32>
    %c0_144 = arith.constant 0 : index
    %c0_145 = arith.constant 0 : index
    %c0_146 = arith.constant 0 : index
    %1083 = vector.load %arg5[%c0_144, %c0_145, %c0_146] : memref<1x2x128xf32, #tpu.memory_space<vmem>>, vector<1x2x128xf32>
    %1084 = vector.shape_cast %1083 : vector<1x2x128xf32> to vector<2x128xf32>
    %1085 = vector.shape_cast %1082 : vector<2x128xf32> to vector<1x2x128xf32>
    tpu.vector_store %arg5[%c0_144, %c0_145, %c0_146], %1085 {strides = array<i32>} : memref<1x2x128xf32, #tpu.memory_space<vmem>>, vector<1x2x128xf32>,
    return
  }
  func.func @transform_0(%arg0: i32, %arg1: memref<32xf32, #tpu.memory_space<smem>>, %arg2: memref<32xf32, #tpu.memory_space<smem>>) -> (i32, i32, i32) {
    %c0_i32 = arith.constant 0 : i32
    %c0_i32_0 = arith.constant 0 : i32
    %c0_i32_1 = arith.constant 0 : i32
    return %arg0, %c0_i32, %c0_i32_0 : i32, i32, i32
  }
  func.func @transform_1(%arg0: i32, %arg1: memref<32xf32, #tpu.memory_space<smem>>, %arg2: memref<32xf32, #tpu.memory_space<smem>>) -> (i32, i32) {
    %c0_i32 = arith.constant 0 : i32
    %c0_i32_0 = arith.constant 0 : i32
    %c0_i32_1 = arith.constant 0 : i32
    return %c0_i32, %c0_i32_0 : i32, i32
  }
  func.func @transform_2(%arg0: i32, %arg1: memref<32xf32, #tpu.memory_space<smem>>, %arg2: memref<32xf32, #tpu.memory_space<smem>>) -> (i32, i32, i32) {
    %c0_i32 = arith.constant 0 : i32
    %c0_i32_0 = arith.constant 0 : i32
    %c0_i32_1 = arith.constant 0 : i32
    return %arg0, %c0_i32, %c0_i32_0 : i32, i32, i32
  }
}

</mosaic_0001>

<bundles_post_ra>
// kernel: tpu_custom_call.1
= control target key start
LH: loop header
LB: loop body
LE: loop exit
PB: predicated region body
PF: predicated region fallthrough
CT: control target
= control target key end

     0   :  { %s1840_s0 = inlined_call_operand.hbm [shape: f32[32], index: 0, kind: input, shape index: {}]   ;;  %s1841_s2 = inlined_call_operand.hbm [shape: f32[4,32,128], index: 2, kind: input, shape index: {}]   ;;  %s1842_s3 = inlined_call_operand.hbm [shape: f32[32,128], index: 3, kind: input, shape index: {}]   ;;  %s1843_s4 = inlined_call_operand.hbm [shape: f32[2,2,128], index: 4, kind: output, shape index: {}]   ;;  %s1844_s1 = inlined_call_operand.vmem [shape: f32[32], index: 1, kind: input, shape index: {}]  }
   0x1   :  { %s1115_s17 = scalar_lea.hbm %s1840_s0, 16 }
   0x2   :  { %p1116_p0 = scmp.ne.s32.totalorder %s1840_s0, %s1115_s17  ;;  %p1119_p1 = scmp.lt.u32.totalorder %s1115_s17, %s1840_s0 }
   0x4   :  { %p1121_p2 = pnand %p1119_p1, %p1116_p0 }
   0x6   :  { %1124 = shalt.err (!%p1121_p2)  }
   0x7   :  { %s1269_s22 = smov [#allocation3]   ;;  %s11_s27 = sshll.u32 %s1844_s1, 4  ;;  %s12_s27 = int_to_ptr.vmem [resolvable:$true] %s11_s27 }
   0x8   :  { %10 = dma.hbm_to_smem %s1840_s0, 16, %s1269_s22, [#allocation2] }
   0x9   :  { %s1125_s28 = scalar_lea.vmem %s12_s27, 16  ;;  %p1130_p4 = scmp.lt.s32.totalorder %s12_s27, %s12_s27 }
   0xa   :  { %p1126_p3 = scmp.ne.s32.totalorder %s12_s27, %s1125_s28  ;;  %p1131_p5 = scmp.lt.s32.totalorder %s1125_s28, %s1125_s28 }
   0xc   :  { %p1132_p6 = por %p1131_p5, %p1130_p4 }
   0xe   :  { %p1133_p7 = pnand %p1132_p6, %p1126_p3 }
  0x10   :  { %1136 = shalt.err (!%p1133_p7)  }
  0x11   :  { %s1270_s29 = smov [#allocation4]  }
  0x12   :  { %14 = dma.vmem_to_smem %s12_s27, 16, %s1270_s29, [#allocation2] }
  0x13   :  { %1239 = dma.done.wait [#allocation2], 32 }
  0x14   :  { %1240 = vsyncadd [#allocation2], 4294967264 }
  0x15   :  { %16 = sfence }
  0x16   :  { %17 = vsyncpa [#allocation6], 0 }
  0x17   :  { %19 = vsyncpa [#allocation6 + $0x1], 0 }
  0x18   :  { %20 = vsyncpa [#allocation9], 0 }
  0x19   :  { %21 = vsyncpa [#allocation7], 0 }
  0x1a   :  { %23 = vsyncpa [#allocation7 + $0x1], 0  ;;  %s1316_s0 = smov 0   ;;  %s1318_s1 = smov 0  }
  0x1b   :  { %s1320_s30 = smov 0   ;;  %s1322_s5 = smov 0  }
  0x1c LB: > { %s1337_s6 = sadd.s32 4294967295, %s1267_s5   ;;  %s990_s7 = sadd.s32 4294967294, %s1267_s5   ;;  %s1267_s5 = sphi %s1322_s5, %s1864_s5   ;;  %s1263_s30 = sphi %s1320_s30, %s1863_s30   ;;  %s1259_s1 = sphi %s1318_s1, %s1862_s1   ;;  %s1255_s0 = sphi %s1316_s0, %s1861_s0  }
  0x1d   : > { %p49_p8 = scmp.ne.s32.totalorder %s1259_s1, %s1255_s0  ;;  %p1845_p9 = scmp.eq.s32.totalorder %s1337_s6, 0 }
  0x1e   : > { %p100_p11 = scmp.eq.s32.totalorder %s990_s7, 1  ;;  %p991_p13 = scmp.ge.s32.totalorder %s1267_s5, 1 }
  0x1f   : > { %p1346_p12 = por %p1845_p9, %p49_p8  ;;  %p107_p1 = scmp.lt.s32.totalorder %s1267_s5, 3 }
  0x20   : > { %p1351_p0 = por %p100_p11, %p49_p8  ;;  %s1271_s11 = smov [#allocation8]  }
  0x21   : > { %s1848_s8 = scalar_select %p1346_p12, 1, 0 }
  0x22   : > { %s1849_s9 = scalar_select %p1351_p0, 1, 0 }
  0x23   : > { %p1356_p2 = pnand %p991_p13, %p107_p1  ;;  %s119_s12 = sshll.u32 %s1271_s11, 4  ;;  %s1360_s12 = int_to_ptr.vmem [resolvable:$true] %s119_s12 }
  0x24   : > { %s1372_s14 = sadd.s32 1, %s1267_s5   ;;  %s36_s15 = sadd.s32 1, %s1263_s30 }
  0x25   : > { %s1850_s10 = scalar_select %p1356_p2, 1, 0 }
  0x26   : > { %p1058_p3 = pneg %p1356_p2  ;;  %s33_s16 = ssub.s32 %s1267_s5, %s1372_s14 }
  0x27   : > { %s1137_s19 = scalar_lea.hbm %s1842_s3, 512 }
  0x28   : > { %p1367_p5 = pnand %p1058_p3, %p1845_p9  ;;  %p1138_p6 = scmp.ne.s32.totalorder %s1842_s3, %s1137_s19 }
  0x29   : > { %p1144_p13 = scmp.lt.u32.totalorder %s1137_s19, %s1842_s3 }
  0x2a   : > { %p1139_p7 = pneg %p1367_p5 }
  0x2c   : > { %p1140_p8 = pnand %p1139_p7, %p1138_p6 }
  0x2e   : > { %p1141_p11 = pneg %p1140_p8 }
  0x30   : > { %p1146_p1 = pnand %p1144_p13, %p1141_p11 }
  0x32   : > { %1149 = shalt.err (!%p1146_p1)
}
  0x33   : > { %s1150_s24 = scalar_lea.vmem %s1360_s12, 512  ;;  %p1158_p10 = scmp.lt.s32.totalorder %s1360_s12, %s1360_s12 }
  0x34   : > { %p1151_p3 = scmp.ne.s32.totalorder %s1360_s12, %s1150_s24  ;;  %p1159_p0 = scmp.lt.s32.totalorder %s1150_s24, %s1150_s24 }
  0x36   : > { %p1153_p4 = pnand %p1151_p3, %p1139_p7  ;;  %p1160_p12 = por %p1159_p0, %p1158_p10 }
  0x38   : > { %p1154_p9 = pneg %p1153_p4 }
  0x3a   : > { %p1161_p2 = pnand %p1160_p12, %p1154_p9 }
  0x3c   : > { %1164 = shalt.err (!%p1161_p2)
}
  0x3d   : > { %s1272_s25 = smov 128   ;;  %s1273_s26 = smov 8  }
  0x3e   : > { %1061 = dma.hbm_to_vmem [thread:$0]  (!%p1367_p5), %s1842_s3, 512, %s1360_s12, [#allocation9], %s1272_s25, %s1272_s25, %s1273_s26  }
  0x3f   : > { %p34_p9 = scmp.eq.s32.totalorder %s33_s16, 0  ;;  %p43_p10 = scmp.ne.s32.totalorder %s1263_s30, %s1259_s1 }
  0x40   : > { %p44_p12 = scmp.eq.s32.totalorder %s1267_s5, 0  ;;  %p1071_p0 = scmp.lt.s32.totalorder %s1267_s5, 2 }
  0x41   : > { %s1406_s29 = scalar_select %p34_p9, %s1263_s30, %s36_s15  }
  0x42   : > { %p45_p2 = por %p44_p12, %p43_p10  ;;  %p1852_p4 = scmp.eq.s32.totalorder %s1337_s6, 1 }
  0x43   : > { %s133_s11 = sand.u32 1, %s1263_s30   ;;  %s1014_s13 = sshll.u32 %s1267_s5, 10 }
  0x44   : > { %p1410_p6 = por %p1852_p4, %p43_p10  ;;  %s994_s17 = sshll.u32 %s133_s11, 6 }
  0x45   : > { %s1419_s20 = scalar_lea.hbm %s1841_s2, %s1014_s13  ;;  %s137_s12 = scalar_lea.vmem [#allocation5], %s994_s17 }
  0x46   : > { %s145_s15 = sshll.u32 %s137_s12, 4  ;;  %p1421_p5 = pnand %p1071_p0, %p45_p2  ;;  %s1425_s15 = int_to_ptr.vmem [resolvable:$true] %s145_s15 }
  0x47   : > { %s1427_s21 = scalar_lea.sflag [#allocation6], %s133_s11  ;;  %s1165_s22 = scalar_lea.hbm %s1419_s20, 1024 }
  0x48   : > { %p1166_p7 = scmp.ne.s32.totalorder %s1419_s20, %s1165_s22  ;;  %p1167_p8 = pneg %p1421_p5 }
  0x49   : > { %s1170_s27 = scalar_lea.hbm %s1841_s2, 2048  ;;  %p1171_p1 = scmp.lt.u32.totalorder %s1419_s20, %s1841_s2 }
  0x4a   : > { %p1168_p11 = pnand %p1167_p8, %p1166_p7  ;;  %p1172_p3 = scmp.lt.u32.totalorder %s1170_s27, %s1165_s22 }
  0x4b   : > { %p1174_p10 = scmp.lt.u32.totalorder %s1165_s22, %s1419_s20 }
  0x4c   : > { %p1169_p13 = pneg %p1168_p11  ;;  %p1173_p9 = por %p1172_p3, %p1171_p1 }
  0x4e   : > { %p1175_p12 = por %p1174_p10, %p1173_p9 }
  0x50   : > { %p1176_p0 = pnand %p1175_p12, %p1169_p13 }
  0x52   : > { %1179 = shalt.err (!%p1176_p0)
}
  0x53   : > { %s1180_s11 = scalar_lea.vmem %s1425_s15, 1024  ;;  %s1274_s17 = smov [#allocation5]  }
  0x54   : > { %p1181_p2 = scmp.ne.s32.totalorder %s1425_s15, %s1180_s11  ;;  %s1185_s18 = sshll.u32 %s1274_s17, 4  ;;  %s1186_s18 = int_to_ptr.vmem [resolvable:$false] %s1185_s18 }
  0x55   : > { %s1187_s19 = scalar_lea.vmem %s1186_s18, 2048  ;;  %p1188_p11 = scmp.lt.s32.totalorder %s1425_s15, %s1186_s18 }
  0x56   : > { %p1183_p4 = pnand %p1181_p2, %p1167_p8  ;;  %p1189_p1 = scmp.lt.s32.totalorder %s1187_s19, %s1180_s11 }
  0x58   : > { %p1184_p7 = pneg %p1183_p4  ;;  %p1190_p3 = por %p1189_p1, %p1188_p11 }
  0x5a   : > { %p1191_p9 = pnand %p1190_p3, %p1184_p7 }
  0x5c   : > { %1194 = shalt.err (!%p1191_p9)
}
  0x5d   : > { %1065 = dma.hbm_to_vmem [thread:$0]  (!%p1421_p5), %s1419_s20, 1024, %s1425_s15, %s1427_s21, %s1272_s25, %s1272_s25, %s1273_s26  }
  0x5e   : > { %p1855_p8 = scmp.ne.s32.totalorder %s1850_s10, 0 }
  0x5f   : > { %s1461_s12 = sand.u32 (!%p1855_p8), 1, %s1259_s1   ;;  %p1856_p13 = scmp.ne.s32.totalorder (!%p1855_p8), %s1848_s8, 0 }
  0x60   : > { %157 = sbr.rel (%p1855_p8) target bundleno = 471 (0x1d7), region = 28  ;;  %s999_s22 = sshll.u32 (!%p1855_p8), %s1461_s12, 6 }
  0x61   : > { %s160_s23 = scalar_lea.sflag (!%p1855_p8), [#allocation6], %s1461_s12  ;;  %s1465_s24 = scalar_lea.vmem (!%p1855_p8), [#allocation5], %s999_s22 }
  0x67   : > { %1242 = dma.done.wait (%p1856_p13), %s160_s23, 1024  }
  0x68   : > { %1244 = vsyncadd (%p1856_p13), %s160_s23, 4294966272  ;;  %p1857_p5 = scmp.eq.s32.totalorder %s1337_s6, 0 }
  0x6a   : > { %1246 = dma.done.wait (%p1857_p5), [#allocation9], 512   ;;  %p1858_p10 = pmov %p1857_p5 }
  0x6b   : > { %s1476_s10 = sshll.u32 %s1337_s6, 4  ;;  %v1485_v0 = vld [vmem:[%s1465_s24] sm:$0xff]  ;;  %v1488_v1 = vld [vmem:[%s1465_s24 + $0x8] sm:$0xff]  ;;  %v1491_v2 = vld [vmem:[%s1465_s24 + $0x10] sm:$0xff] }
  0x6c   : > { %1248 = vsyncadd (%p1858_p10), [#allocation9], 4294966784  ;;  %s194_s25 = sld [smem:[#allocation3 + %s1476_s10]]  ;;  %s197_s26 = sadd.s32 2, %s1476_s10  ;;  %v1494_v4 = vld [vmem:[%s1465_s24 + $0x18] sm:$0xff]  ;;  %v1496_v5 = vld [vmem:[#allocation8] sm:$0xff] }
  0x6d   : > { %s209_s8 = sld [smem:[#allocation4 + %s1476_s10]]  ;;  %s195_s16 = sadd.s32 1, %s1476_s10  ;;  %v1498_v6 = vld [vmem:[#allocation8 + $0x8] sm:$0xff]  ;;  %v1503_v11 = vld [vmem:[#allocation8 + $0x10] sm:$0xff]  ;;  %v1505_v12 = vld [vmem:[#allocation8 + $0x18] sm:$0xff] }
  0x6e   : > { %s198_s20 = sld [smem:[#allocation3 + %s197_s26]]  ;;  %s199_s28 = sadd.s32 3, %s1476_s10 }
  0x6f   : > { %s1481_s15 = sld [smem:[#allocation4 + %s197_s26]]  ;;  %s201_s17 = sadd.s32 4, %s1476_s10 }
  0x70   : > { %s1510_s21 = sld [smem:[#allocation3 + %s195_s16]]  ;;  %s203_s22 = sadd.s32 5, %s1476_s10 }
  0x71   : > { %s1514_s27 = sld [smem:[#allocation4 + %s195_s16]] }
  0x72   : > { %v225_v3 = vstv %s194_s25  ;;  %s1526_s13 = sld [smem:[#allocation3 + %s199_s28]] }
  0x73   : > { %v226_v7 = vsub.f32 %v225_v3, %v1485_v0  ;;  %v227_v8 = vstv %s209_s8  ;;  %v233_v9 = vsub.f32 %v225_v3, %v1488_v1  ;;  %v239_v10 = vsub.f32 %v225_v3, %v1491_v2  ;;  %s1529_s11 = sld [smem:[#allocation4 + %s199_s28]]  ;;  %s205_s8 = sadd.s32 6, %s1476_s10 }
  0x74   : > { %v228_v13 = vsub.f32 %v227_v8, %v1496_v5  ;;  %v234_v14 = vsub.f32 %v227_v8, %v1498_v6  ;;  %v245_v15 = vsub.f32 %v225_v3, %v1494_v4  ;;  %v277_v16 = vstv %s198_s20  ;;  %s1541_s18 = sld [smem:[#allocation3 + %s201_s17]] }
  0x75   : > { %v229_v17 = vmul.f32 %v226_v7, %v226_v7  ;;  %v235_v18 = vmul.f32 %v233_v9, %v233_v9  ;;  %v240_v19 = vsub.f32 %v227_v8, %v1503_v11  ;;  %v241_v20 = vmul.f32 %v239_v10, %v239_v10  ;;  %s1544_s19 = sld [smem:[#allocation4 + %s201_s17]] }
  0x76   : > { %v230_v21 = vmul.f32 %v228_v13, %v228_v13  ;;  %v236_v22 = vmul.f32 %v234_v14, %v234_v14  ;;  %v246_v23 = vsub.f32 %v227_v8, %v1505_v12  ;;  %v247_v24 = vmul.f32 %v245_v15, %v245_v15  ;;  %s1555_s23 = sld [smem:[#allocation3 + %s203_s22]] }
  0x77   : > { %v242_v25 = vmul.f32 %v240_v19, %v240_v19  ;;  %v278_v26 = vsub.f32 %v277_v16, %v1485_v0  ;;  %v279_v27 = vstv %s1481_s15  ;;  %v285_v28 = vsub.f32 %v277_v16, %v1488_v1  ;;  %s1557_s25 = sld [smem:[#allocation4 + %s203_s22]]  ;;  %s207_s15 = sadd.s32 7, %s1476_s10 }
  0x78   : > { %v231_v29 = vadd.f32 %v230_v21, %v229_v17  ;;  %v237_v30 = vadd.f32 %v236_v22, %v235_v18  ;;  %v248_v31 = vmul.f32 %v246_v23, %v246_v23  ;;  %v280_v32 = vsub.f32 %v279_v27, %v1496_v5  ;;  %s1571_s26 = sld [smem:[#allocation3 + %s205_s8]] }
  0x79   : > { %v243_v33 = vadd.f32 %v242_v25, %v241_v20  ;;  %v281_v34 = vmul.f32 %v278_v26, %v278_v26  ;;  %v286_v35 = vsub.f32 %v279_v27, %v1498_v6  ;;  %v287_v36 = vmul.f32 %v285_v28, %v285_v28  ;;  %s1575_s20 = sld [smem:[#allocation4 + %s205_s8]] }
  0x7a   : > { %v232_v37 = vmin.f32 %v231_v29, 1e+30  ;;  %v249_v38 = vadd.f32 %v248_v31, %v247_v24  ;;  %v282_v39 = vmul.f32 %v280_v32, %v280_v32  ;;  %v291_v40 = vsub.f32 %v277_v16, %v1491_v2  ;;  %s1585_s16 = sld [smem:[#allocation3 + %s207_s15]] }
  0x7b   : > { %v288_v41 = vmul.f32 %v286_v35, %v286_v35  ;;  %v292_v42 = vsub.f32 %v279_v27, %v1503_v11  ;;  %v297_v43 = vsub.f32 %v277_v16, %v1494_v4  ;;  %v298_v44 = vsub.f32 %v279_v27, %v1505_v12 }
  0x7c   : > { %v238_v45 = vmin.f32 %v232_v37, %v237_v30  ;;  %v283_v46 = vadd.f32 %v282_v39, %v281_v34  ;;  %v293_v47 = vmul.f32 %v291_v40, %v291_v40  ;;  %v251_v48 = vstv %s1510_s21  ;;  %s1587_s21 = sld [smem:[#allocation4 + %s207_s15]] }
  0x7d   : > { %v289_v49 = vadd.f32 %v288_v41, %v287_v36  ;;  %v294_v50 = vmul.f32 %v292_v42, %v292_v42  ;;  %v299_v51 = vmul.f32 %v297_v43, %v297_v43  ;;  %v300_v52 = vmul.f32 %v298_v44, %v298_v44 }
  0x7e   : > { %v244_v53 = vmin.f32 %v238_v45, %v243_v33  ;;  %v284_v54 = vmin.f32 %v283_v46, 1e+30  ;;  %v252_v55 = vsub.f32 %v251_v48, %v1485_v0  ;;  %v253_v56 = vstv %s1514_s27  ;;  %s1596_s27 = sadd.s32 8, %s1476_s10 }
  0x7f   : > { %v295_v57 = vadd.f32 %v294_v50, %v293_v47  ;;  %v301_v58 = vadd.f32 %v300_v52, %v299_v51  ;;  %v254_v59 = vsub.f32 %v253_v56, %v1496_v5  ;;  %v259_v60 = vsub.f32 %v251_v48, %v1488_v1  ;;  %s1604_s10 = sld [smem:[#allocation3 + %s1596_s27]]  ;;  %s556_s22 = sadd.s32 3, %s1596_s27 }
  0x80   : > { %v250_v61 = vmin.f32 %v244_v53, %v249_v38  ;;  %v290_v62 = vmin.f32 %v284_v54, %v289_v49  ;;  %v255_v63 = vmul.f32 %v252_v55, %v252_v55  ;;  %v260_v3 = vsub.f32 %v253_v56, %v1498_v6  ;;  %s1609_s28 = sld [smem:[#allocation4 + %s1596_s27]]  ;;  %s558_s8 = sadd.s32 4, %s1596_s27 }
  0x81   : > { %v256_v7 = vmul.f32 %v254_v59, %v254_v59  ;;  %v261_v8 = vmul.f32 %v259_v60, %v259_v60  ;;  %v265_v9 = vsub.f32 %v251_v48, %v1491_v2  ;;  %v266_v10 = vsub.f32 %v253_v56, %v1503_v11  ;;  %s560_s15 = sadd.s32 5, %s1596_s27 }
  0x82   : > { %433 = vmin.xlane.f32.xlu0 %v250_v61  ;;  %v296_v13 = vmin.f32 %v290_v62, %v295_v57  ;;  %v262_v14 = vmul.f32 %v260_v3, %v260_v3  ;;  %v271_v15 = vsub.f32 %v251_v48, %v1494_v4  ;;  %v272_v16 = vsub.f32 %v253_v56, %v1505_v12 }
  0x83   : > { %v257_v17 = vadd.f32 %v256_v7, %v255_v63  ;;  %v267_v18 = vmul.f32 %v265_v9, %v265_v9  ;;  %v268_v19 = vmul.f32 %v266_v10, %v266_v10  ;;  %v303_v20 = vstv %s1526_s13  ;;  %s552_s13 = sadd.s32 1, %s1596_s27 }
  0x84   : > { %v302_v21 = vmin.f32 %v296_v13, %v301_v58  ;;  %v263_v22 = vadd.f32 %v262_v14, %v261_v8  ;;  %v273_v23 = vmul.f32 %v271_v15, %v271_v15  ;;  %v274_v24 = vmul.f32 %v272_v16, %v272_v16  ;;  %s1624_s17 = sld [smem:[#allocation4 + %s552_s13]] }
  0x85   : > { %v258_v25 = vmin.f32 %v257_v17, 1e+30  ;;  %v269_v26 = vadd.f32 %v268_v19, %v267_v18  ;;  %v304_v27 = vsub.f32 %v303_v20, %v1485_v0  ;;  %v305_v28 = vstv %s1529_s11  ;;  %s1622_s11 = sld [smem:[#allocation3 + %s552_s13]] }
  0x86   : > { %457 = vmin.xlane.f32.xlu1 %v302_v21  ;;  %v275_v29 = vadd.f32 %v274_v24, %v273_v23  ;;  %v306_v30 = vsub.f32 %v305_v28, %v1496_v5  ;;  %v311_v31 = vsub.f32 %v303_v20, %v1488_v1  ;;  %v312_v32 = vsub.f32 %v305_v28, %v1498_v6 }
  0x87   : > { %v264_v33 = vmin.f32 %v258_v25, %v263_v22  ;;  %v307_v34 = vmul.f32 %v304_v27, %v304_v27  ;;  %v317_v35 = vsub.f32 %v303_v20, %v1491_v2  ;;  %v318_v36 = vsub.f32 %v305_v28, %v1503_v11 }
  0x88   : > { %v308_v37 = vmul.f32 %v306_v30, %v306_v30  ;;  %v313_v38 = vmul.f32 %v311_v31, %v311_v31  ;;  %v314_v39 = vmul.f32 %v312_v32, %v312_v32  ;;  %v323_v40 = vsub.f32 %v303_v20, %v1494_v4 }
  0x89   : > { %v270_v41 = vmin.f32 %v264_v33, %v269_v26  ;;  %v319_v42 = vmul.f32 %v317_v35, %v317_v35  ;;  %v320_v43 = vmul.f32 %v318_v36, %v318_v36  ;;  %v324_v44 = vsub.f32 %v305_v28, %v1505_v12 }
  0x8a   : > { %v309_v45 = vadd.f32 %v308_v37, %v307_v34  ;;  %v315_v46 = vadd.f32 %v314_v39, %v313_v38  ;;  %v325_v47 = vmul.f32 %v323_v40, %v323_v40  ;;  %v329_v48 = vstv %s1541_s18  ;;  %s554_s18 = sadd.s32 2, %s1596_s27 }
  0x8b   : > { %v276_v49 = vmin.f32 %v270_v41, %v275_v29  ;;  %v321_v50 = vadd.f32 %v320_v43, %v319_v42  ;;  %v326_v51 = vmul.f32 %v324_v44, %v324_v44  ;;  %v330_v52 = vsub.f32 %v329_v48, %v1485_v0 }
  0x8c   : > { %v310_v53 = vmin.f32 %v309_v45, 1e+30  ;;  %v331_v54 = vstv %s1544_s19  ;;  %v337_v55 = vsub.f32 %v329_v48, %v1488_v1  ;;  %v343_v56 = vsub.f32 %v329_v48, %v1491_v2  ;;  %s1651_s19 = sld [smem:[#allocation4 + %s554_s18]] }
  0x8d   : > { %445 = vmin.xlane.f32.xlu0 %v276_v49  ;;  %v327_v57 = vadd.f32 %v326_v51, %v325_v47  ;;  %v332_v58 = vsub.f32 %v331_v54, %v1496_v5  ;;  %v333_v59 = vmul.f32 %v330_v52, %v330_v52  ;;  %v338_v60 = vsub.f32 %v331_v54, %v1498_v6 }
  0x8e   : > { %v316_v61 = vmin.f32 %v310_v53, %v315_v46  ;;  %v339_v62 = vmul.f32 %v337_v55, %v337_v55  ;;  %v344_v63 = vsub.f32 %v331_v54, %v1503_v11  ;;  %v345_v3 = vmul.f32 %v343_v56, %v343_v56 }
  0x8f   : > { %v334_v7 = vmul.f32 %v332_v58, %v332_v58  ;;  %v340_v8 = vmul.f32 %v338_v60, %v338_v60  ;;  %v349_v9 = vsub.f32 %v329_v48, %v1494_v4  ;;  %v350_v10 = vsub.f32 %v331_v54, %v1505_v12 }
  0x90   : > { %v322_v13 = vmin.f32 %v316_v61, %v321_v50  ;;  %v346_v14 = vmul.f32 %v344_v63, %v344_v63  ;;  %v355_v15 = vstv %s1555_s23  ;;  %v357_v16 = vstv %s1557_s25  ;;  %s1661_s23 = sld [smem:[#allocation3 + %s556_s22]] }
  0x91   : > { %v335_v17 = vadd.f32 %v334_v7, %v333_v59  ;;  %v341_v18 = vadd.f32 %v340_v8, %v339_v62  ;;  %v351_v19 = vmul.f32 %v349_v9, %v349_v9  ;;  %v352_v20 = vmul.f32 %v350_v10, %v350_v10  ;;  %s1663_s25 = sld [smem:[#allocation4 + %s556_s22]] }
  0x92   : > { %v328_v21 = vmin.f32 %v322_v13, %v327_v57  ;;  %v347_v22 = vadd.f32 %v346_v14, %v345_v3  ;;  %v356_v23 = vsub.f32 %v355_v15, %v1485_v0  ;;  %v358_v24 = vsub.f32 %v357_v16, %v1496_v5 }
  0x93   : > { %v336_v25 = vmin.f32 %v335_v17, 1e+30  ;;  %v353_v26 = vadd.f32 %v352_v20, %v351_v19  ;;  %v363_v27 = vsub.f32 %v355_v15, %v1488_v1  ;;  %v364_v28 = vsub.f32 %v357_v16, %v1498_v6 }
  0x94   : > { %469 = vmin.xlane.f32.xlu1 %v328_v21  ;;  %v359_v29 = vmul.f32 %v356_v23, %v356_v23  ;;  %v360_v30 = vmul.f32 %v358_v24, %v358_v24  ;;  %v369_v31 = vsub.f32 %v355_v15, %v1491_v2  ;;  %v370_v32 = vsub.f32 %v357_v16, %v1503_v11 }
  0x95   : > { %v342_v33 = vmin.f32 %v336_v25, %v341_v18  ;;  %v365_v34 = vmul.f32 %v363_v27, %v363_v27  ;;  %v366_v35 = vmul.f32 %v364_v28, %v364_v28  ;;  %v375_v36 = vsub.f32 %v355_v15, %v1494_v4 }
  0x96   : > { %v361_v37 = vadd.f32 %v360_v30, %v359_v29  ;;  %v371_v38 = vmul.f32 %v369_v31, %v369_v31  ;;  %v372_v39 = vmul.f32 %v370_v32, %v370_v32  ;;  %v376_v40 = vsub.f32 %v357_v16, %v1505_v12  ;;  %v1620_v32 = vld [vmem:[%s1465_s24 + $0x20] sm:$0xff] }
  0x97   : > { %v348_v41 = vmin.f32 %v342_v33, %v347_v22  ;;  %v367_v42 = vadd.f32 %v366_v35, %v365_v34  ;;  %v377_v43 = vmul.f32 %v375_v36, %v375_v36  ;;  %v381_v44 = vstv %s1571_s26  ;;  %v1628_v35 = vld [vmem:[%s1465_s24 + $0x28] sm:$0xff]  ;;  %v1631_v36 = vld [vmem:[%s1465_s24 + $0x30] sm:$0xff]  ;;  %s1677_s26 = sld [smem:[#allocation3 + %s558_s8]] }
  0x98   : > { %v362_v45 = vmin.f32 %v361_v37, 1e+30  ;;  %v373_v46 = vadd.f32 %v372_v39, %v371_v38  ;;  %v378_v47 = vmul.f32 %v376_v40, %v376_v40  ;;  %v382_v48 = vsub.f32 %v381_v44, %v1485_v0 }
  0x99   : > { %v354_v49 = vmin.f32 %v348_v41, %v353_v26  ;;  %v383_v50 = vstv %s1575_s20  ;;  %v389_v51 = vsub.f32 %v381_v44, %v1488_v1  ;;  %v395_v52 = vsub.f32 %v381_v44, %v1491_v2  ;;  %s1681_s20 = sld [smem:[#allocation4 + %s558_s8]] }
  0x9a   : > { %v368_v53 = vmin.f32 %v362_v45, %v367_v42  ;;  %v379_v54 = vadd.f32 %v378_v47, %v377_v43  ;;  %v384_v55 = vsub.f32 %v383_v50, %v1496_v5  ;;  %v385_v56 = vmul.f32 %v382_v48, %v382_v48  ;;  %v1636_v45 = vld [vmem:[%s1465_s24 + $0x38] sm:$0xff]  ;;  %s1647_s24 = sld [smem:[#allocation3 + %s554_s18]] }
  0x9b   : > { %481 = vmin.xlane.f32.xlu0 %v354_v49  ;;  %v390_v57 = vsub.f32 %v383_v50, %v1498_v6  ;;  %v391_v58 = vmul.f32 %v389_v51, %v389_v51  ;;  %v396_v59 = vsub.f32 %v383_v50, %v1503_v11  ;;  %v397_v60 = vmul.f32 %v395_v52, %v395_v52 }
  0x9c   : > { %v374_v61 = vmin.f32 %v368_v53, %v373_v46  ;;  %v386_v62 = vmul.f32 %v384_v55, %v384_v55  ;;  %v401_v63 = vsub.f32 %v381_v44, %v1494_v4  ;;  %v402_v3 = vsub.f32 %v383_v50, %v1505_v12 }
  0x9d   : > { %v392_v7 = vmul.f32 %v390_v57, %v390_v57  ;;  %v398_v8 = vmul.f32 %v396_v59, %v396_v59  ;;  %v407_v9 = vstv %s1585_s16  ;;  %v409_v10 = vstv %s1587_s21  ;;  %s1691_s16 = sld [smem:[#allocation3 + %s560_s15]] }
  0x9e   : > { %v380_v13 = vmin.f32 %v374_v61, %v379_v54  ;;  %v387_v14 = vadd.f32 %v386_v62, %v385_v56  ;;  %v403_v15 = vmul.f32 %v401_v63, %v401_v63  ;;  %v404_v16 = vmul.f32 %v402_v3, %v402_v3  ;;  %s1693_s21 = sld [smem:[#allocation4 + %s560_s15]] }
  0x9f   : > { %v393_v17 = vadd.f32 %v392_v7, %v391_v58  ;;  %v399_v18 = vadd.f32 %v398_v8, %v397_v60  ;;  %v408_v19 = vsub.f32 %v407_v9, %v1485_v0  ;;  %v410_v20 = vsub.f32 %v409_v10, %v1496_v5 }
  0xa0   : > { %493 = vmin.xlane.f32.xlu1 %v380_v13  ;;  %v388_v21 = vmin.f32 %v387_v14, 1e+30  ;;  %v405_v22 = vadd.f32 %v404_v16, %v403_v15  ;;  %v415_v23 = vsub.f32 %v407_v9, %v1488_v1  ;;  %v416_v24 = vsub.f32 %v409_v10, %v1498_v6 }
  0xa1   : > { %v411_v25 = vmul.f32 %v408_v19, %v408_v19  ;;  %v412_v26 = vmul.f32 %v410_v20, %v410_v20  ;;  %v421_v27 = vsub.f32 %v407_v9, %v1491_v2  ;;  %v422_v28 = vsub.f32 %v409_v10, %v1503_v11 }
  0xa2   : > { %v394_v0 = vmin.f32 %v388_v21, %v393_v17  ;;  %v417_v29 = vmul.f32 %v415_v23, %v415_v23  ;;  %v418_v30 = vmul.f32 %v416_v24, %v416_v24  ;;  %v427_v31 = vsub.f32 %v407_v9, %v1494_v4 }
  0xa3   : > { %v413_v1 = vadd.f32 %v412_v26, %v411_v25  ;;  %v423_v33 = vmul.f32 %v421_v27, %v421_v27  ;;  %v424_v34 = vmul.f32 %v422_v28, %v422_v28  ;;  %v428_v2 = vsub.f32 %v409_v10, %v1505_v12 }
  0xa4   : > { %v400_v37 = vmin.f32 %v394_v0, %v399_v18  ;;  %v419_v4 = vadd.f32 %v418_v30, %v417_v29  ;;  %v429_v38 = vmul.f32 %v427_v31, %v427_v31  ;;  %v580_v39 = vstv %s1604_s10  ;;  %s562_s10 = sadd.s32 6, %s1596_s27 }
  0xa5   : > { %v414_v40 = vmin.f32 %v413_v1, 1e+30  ;;  %v425_v41 = vadd.f32 %v424_v34, %v423_v33  ;;  %v430_v42 = vmul.f32 %v428_v2, %v428_v2  ;;  %v581_v43 = vsub.f32 %v580_v39, %v1620_v32  ;;  %s1711_s13 = sld [smem:[#allocation4 + %s562_s10]] }
  0xa6   : > { %v406_v44 = vmin.f32 %v400_v37, %v405_v22  ;;  %v582_v46 = vstv %s1609_s28  ;;  %v588_v47 = vsub.f32 %v580_v39, %v1628_v35  ;;  %v594_v48 = vsub.f32 %v580_v39, %v1631_v36  ;;  %s1707_s28 = sld [smem:[#allocation3 + %s562_s10]] }
  0xa7   : > { %v420_v49 = vmin.f32 %v414_v40, %v419_v4  ;;  %v431_v50 = vadd.f32 %v430_v42, %v429_v38  ;;  %v583_v51 = vsub.f32 %v582_v46, %v1496_v5  ;;  %v584_v52 = vmul.f32 %v581_v43, %v581_v43 }
  0xa8   : > { %505 = vmin.xlane.f32.xlu0 %v406_v44  ;;  %v589_v53 = vsub.f32 %v582_v46, %v1498_v6  ;;  %v590_v54 = vmul.f32 %v588_v47, %v588_v47  ;;  %v595_v55 = vsub.f32 %v582_v46, %v1503_v11  ;;  %v596_v56 = vmul.f32 %v594_v48, %v594_v48 }
  0xa9   : > { %v426_v57 = vmin.f32 %v420_v49, %v425_v41  ;;  %v585_v58 = vmul.f32 %v583_v51, %v583_v51  ;;  %v600_v59 = vsub.f32 %v580_v39, %v1636_v45  ;;  %v601_v60 = vsub.f32 %v582_v46, %v1505_v12 }
  0xaa   : > { %v591_v61 = vmul.f32 %v589_v53, %v589_v53  ;;  %v597_v62 = vmul.f32 %v595_v55, %v595_v55  ;;  %v606_v63 = vstv %s1622_s11  ;;  %v608_v3 = vstv %s1624_s17  ;;  %s564_s11 = sadd.s32 7, %s1596_s27 }
  0xab   : > { %v432_v7 = vmin.f32 %v426_v57, %v431_v50  ;;  %v586_v8 = vadd.f32 %v585_v58, %v584_v52  ;;  %v602_v9 = vmul.f32 %v600_v59, %v600_v59  ;;  %v603_v10 = vmul.f32 %v601_v60, %v601_v60  ;;  %s1721_s27 = sld [smem:[#allocation3 + %s564_s11]] }
  0xac   : > { %v592_v13 = vadd.f32 %v591_v61, %v590_v54  ;;  %v598_v14 = vadd.f32 %v597_v62, %v596_v56  ;;  %v607_v15 = vsub.f32 %v606_v63, %v1620_v32  ;;  %v609_v16 = vsub.f32 %v608_v3, %v1496_v5  ;;  %s1723_s17 = sld [smem:[#allocation4 + %s564_s11]] }
  0xad   : > { %517 = vmin.xlane.f32.xlu1 %v432_v7  ;;  %v587_v17 = vmin.f32 %v586_v8, 1e+30  ;;  %v604_v18 = vadd.f32 %v603_v10, %v602_v9  ;;  %v614_v19 = vsub.f32 %v606_v63, %v1628_v35  ;;  %v615_v20 = vsub.f32 %v608_v3, %v1498_v6 }
  0xae   : > { %v610_v21 = vmul.f32 %v607_v15, %v607_v15  ;;  %v611_v22 = vmul.f32 %v609_v16, %v609_v16  ;;  %v620_v23 = vsub.f32 %v606_v63, %v1631_v36  ;;  %v621_v24 = vsub.f32 %v608_v3, %v1503_v11 }
  0xaf   : > { %v593_v25 = vmin.f32 %v587_v17, %v592_v13  ;;  %v616_v26 = vmul.f32 %v614_v19, %v614_v19  ;;  %v617_v27 = vmul.f32 %v615_v20, %v615_v20  ;;  %v626_v28 = vsub.f32 %v606_v63, %v1636_v45 }
  0xb0   : > { %v612_v0 = vadd.f32 %v611_v22, %v610_v21  ;;  %v622_v29 = vmul.f32 %v620_v23, %v620_v23  ;;  %v623_v30 = vmul.f32 %v621_v24, %v621_v24  ;;  %v627_v31 = vsub.f32 %v608_v3, %v1505_v12 }
  0xb1   : > { %v599_v1 = vmin.f32 %v593_v25, %v598_v14  ;;  %v618_v33 = vadd.f32 %v617_v27, %v616_v26  ;;  %v628_v34 = vmul.f32 %v626_v28, %v626_v28  ;;  %v632_v2 = vstv %s1647_s24 }
  0xb2   : > { %v613_v37 = vmin.f32 %v612_v0, 1e+30  ;;  %v624_v4 = vadd.f32 %v623_v30, %v622_v29  ;;  %v629_v38 = vmul.f32 %v627_v31, %v627_v31  ;;  %v633_v39 = vsub.f32 %v632_v2, %v1620_v32 }
  0xb3   : > { %v605_v40 = vmin.f32 %v599_v1, %v604_v18  ;;  %v634_v41 = vstv %s1651_s19  ;;  %v640_v42 = vsub.f32 %v632_v2, %v1628_v35  ;;  %v646_v43 = vsub.f32 %v632_v2, %v1631_v36 }
  0xb4   : > { %v619_v44 = vmin.f32 %v613_v37, %v618_v33  ;;  %v630_v46 = vadd.f32 %v629_v38, %v628_v34  ;;  %v635_v47 = vsub.f32 %v634_v41, %v1496_v5  ;;  %v636_v48 = vmul.f32 %v633_v39, %v633_v39 }
  0xb5   : > { %788 = vmin.xlane.f32.xlu0 %v605_v40  ;;  %v641_v49 = vsub.f32 %v634_v41, %v1498_v6  ;;  %v642_v50 = vmul.f32 %v640_v42, %v640_v42  ;;  %v647_v51 = vsub.f32 %v634_v41, %v1503_v11  ;;  %v648_v52 = vmul.f32 %v646_v43, %v646_v43 }
  0xb6   : > { %v625_v53 = vmin.f32 %v619_v44, %v624_v4  ;;  %v637_v54 = vmul.f32 %v635_v47, %v635_v47  ;;  %v652_v55 = vsub.f32 %v632_v2, %v1636_v45  ;;  %v653_v56 = vsub.f32 %v634_v41, %v1505_v12 }
  0xb7   : > { %v643_v57 = vmul.f32 %v641_v49, %v641_v49  ;;  %v649_v58 = vmul.f32 %v647_v51, %v647_v51  ;;  %v658_v59 = vstv %s1661_s23  ;;  %v660_v60 = vstv %s1663_s25 }
  0xb8   : > { %v631_v61 = vmin.f32 %v625_v53, %v630_v46  ;;  %v638_v62 = vadd.f32 %v637_v54, %v636_v48  ;;  %v654_v63 = vmul.f32 %v652_v55, %v652_v55  ;;  %v655_v3 = vmul.f32 %v653_v56, %v653_v56 }
  0xb9   : > { %v644_v7 = vadd.f32 %v643_v57, %v642_v50  ;;  %v650_v8 = vadd.f32 %v649_v58, %v648_v52  ;;  %v659_v9 = vsub.f32 %v658_v59, %v1620_v32  ;;  %v661_v10 = vsub.f32 %v660_v60, %v1496_v5 }
  0xba   : > { %799 = vmin.xlane.f32.xlu1 %v631_v61  ;;  %v639_v13 = vmin.f32 %v638_v62, 1e+30  ;;  %v656_v14 = vadd.f32 %v655_v3, %v654_v63  ;;  %v666_v15 = vsub.f32 %v658_v59, %v1628_v35  ;;  %v667_v16 = vsub.f32 %v660_v60, %v1498_v6 }
  0xbb   : > { %v662_v17 = vmul.f32 %v659_v9, %v659_v9  ;;  %v663_v18 = vmul.f32 %v661_v10, %v661_v10  ;;  %v672_v19 = vsub.f32 %v658_v59, %v1631_v36  ;;  %v673_v20 = vsub.f32 %v660_v60, %v1503_v11 }
  0xbc   : > { %v645_v21 = vmin.f32 %v639_v13, %v644_v7  ;;  %v668_v22 = vmul.f32 %v666_v15, %v666_v15  ;;  %v669_v23 = vmul.f32 %v667_v16, %v667_v16  ;;  %v678_v24 = vsub.f32 %v658_v59, %v1636_v45 }
  0xbd   : > { %v664_v25 = vadd.f32 %v663_v18, %v662_v17  ;;  %v674_v26 = vmul.f32 %v672_v19, %v672_v19  ;;  %v675_v27 = vmul.f32 %v673_v20, %v673_v20  ;;  %v679_v28 = vsub.f32 %v660_v60, %v1505_v12 }
  0xbe   : > { %v651_v0 = vmin.f32 %v645_v21, %v650_v8  ;;  %v670_v29 = vadd.f32 %v669_v23, %v668_v22  ;;  %v680_v30 = vmul.f32 %v678_v24, %v678_v24  ;;  %v684_v31 = vstv %s1677_s26 }
  0xbf   : > { %v665_v1 = vmin.f32 %v664_v25, 1e+30  ;;  %v676_v33 = vadd.f32 %v675_v27, %v674_v26  ;;  %v681_v34 = vmul.f32 %v679_v28, %v679_v28  ;;  %v685_v2 = vsub.f32 %v684_v31, %v1620_v32 }
  0xc0   : > { %v657_v37 = vmin.f32 %v651_v0, %v656_v14  ;;  %v686_v4 = vstv %s1681_s20  ;;  %v692_v38 = vsub.f32 %v684_v31, %v1628_v35  ;;  %v698_v39 = vsub.f32 %v684_v31, %v1631_v36 }
  0xc1   : > { %v671_v40 = vmin.f32 %v665_v1, %v670_v29  ;;  %v682_v41 = vadd.f32 %v681_v34, %v680_v30  ;;  %v687_v42 = vsub.f32 %v686_v4, %v1496_v5  ;;  %v688_v43 = vmul.f32 %v685_v2, %v685_v2 }
  0xc2   : > { %810 = vmin.xlane.f32.xlu0 %v657_v37  ;;  %v693_v44 = vsub.f32 %v686_v4, %v1498_v6  ;;  %v694_v46 = vmul.f32 %v692_v38, %v692_v38  ;;  %v699_v47 = vsub.f32 %v686_v4, %v1503_v11  ;;  %v700_v48 = vmul.f32 %v698_v39, %v698_v39 }
  0xc3   : > { %v677_v49 = vmin.f32 %v671_v40, %v676_v33  ;;  %v689_v50 = vmul.f32 %v687_v42, %v687_v42  ;;  %v704_v51 = vsub.f32 %v684_v31, %v1636_v45  ;;  %v705_v52 = vsub.f32 %v686_v4, %v1505_v12 }
  0xc4   : > { %v695_v53 = vmul.f32 %v693_v44, %v693_v44  ;;  %v701_v54 = vmul.f32 %v699_v47, %v699_v47  ;;  %v710_v55 = vstv %s1691_s16  ;;  %v712_v56 = vstv %s1693_s21 }
  0xc5   : > { %v683_v57 = vmin.f32 %v677_v49, %v682_v41  ;;  %v690_v58 = vadd.f32 %v689_v50, %v688_v43  ;;  %v706_v59 = vmul.f32 %v704_v51, %v704_v51  ;;  %v707_v60 = vmul.f32 %v705_v52, %v705_v52 }
  0xc6   : > { %v696_v61 = vadd.f32 %v695_v53, %v694_v46  ;;  %v702_v62 = vadd.f32 %v701_v54, %v700_v48  ;;  %v711_v63 = vsub.f32 %v710_v55, %v1620_v32  ;;  %v713_v3 = vsub.f32 %v712_v56, %v1496_v5 }
  0xc7   : > { %821 = vmin.xlane.f32.xlu1 %v683_v57  ;;  %v691_v7 = vmin.f32 %v690_v58, 1e+30  ;;  %v708_v8 = vadd.f32 %v707_v60, %v706_v59  ;;  %v718_v9 = vsub.f32 %v710_v55, %v1628_v35  ;;  %v719_v10 = vsub.f32 %v712_v56, %v1498_v6 }
  0xc8   : > { %v714_v13 = vmul.f32 %v711_v63, %v711_v63  ;;  %v715_v14 = vmul.f32 %v713_v3, %v713_v3  ;;  %v724_v15 = vsub.f32 %v710_v55, %v1631_v36  ;;  %v725_v16 = vsub.f32 %v712_v56, %v1503_v11 }
  0xc9   : > { %v697_v17 = vmin.f32 %v691_v7, %v696_v61  ;;  %v720_v18 = vmul.f32 %v718_v9, %v718_v9  ;;  %v721_v19 = vmul.f32 %v719_v10, %v719_v10  ;;  %v730_v20 = vsub.f32 %v710_v55, %v1636_v45 }
  0xca   : > { %v716_v21 = vadd.f32 %v715_v14, %v714_v13  ;;  %v726_v22 = vmul.f32 %v724_v15, %v724_v15  ;;  %v727_v23 = vmul.f32 %v725_v16, %v725_v16  ;;  %v731_v24 = vsub.f32 %v712_v56, %v1505_v12 }
  0xcb   : > { %v703_v25 = vmin.f32 %v697_v17, %v702_v62  ;;  %v722_v26 = vadd.f32 %v721_v19, %v720_v18  ;;  %v732_v27 = vmul.f32 %v730_v20, %v730_v20  ;;  %v736_v28 = vstv %s1707_s28 }
  0xcc   : > { %v717_v0 = vmin.f32 %v716_v21, 1e+30  ;;  %v728_v29 = vadd.f32 %v727_v23, %v726_v22  ;;  %v733_v30 = vmul.f32 %v731_v24, %v731_v24  ;;  %v737_v31 = vsub.f32 %v736_v28, %v1620_v32 }
  0xcd   : > { %v709_v1 = vmin.f32 %v703_v25, %v708_v8  ;;  %v738_v33 = vstv %s1711_s13  ;;  %v744_v34 = vsub.f32 %v736_v28, %v1628_v35  ;;  %v750_v2 = vsub.f32 %v736_v28, %v1631_v36 }
  0xce   : > { %v723_v37 = vmin.f32 %v717_v0, %v722_v26  ;;  %v734_v4 = vadd.f32 %v733_v30, %v732_v27  ;;  %v739_v38 = vsub.f32 %v738_v33, %v1496_v5  ;;  %v740_v39 = vmul.f32 %v737_v31, %v737_v31 }
  0xcf   : > { %832 = vmin.xlane.f32.xlu0 %v709_v1  ;;  %v745_v40 = vsub.f32 %v738_v33, %v1498_v6  ;;  %v746_v41 = vmul.f32 %v744_v34, %v744_v34  ;;  %v751_v42 = vsub.f32 %v738_v33, %v1503_v11  ;;  %v752_v43 = vmul.f32 %v750_v2, %v750_v2 }
  0xd0   : > { %v729_v44 = vmin.f32 %v723_v37, %v728_v29  ;;  %v741_v46 = vmul.f32 %v739_v38, %v739_v38  ;;  %v756_v47 = vsub.f32 %v736_v28, %v1636_v45  ;;  %v757_v48 = vsub.f32 %v738_v33, %v1505_v12 }
  0xd1   : > { %v747_v49 = vmul.f32 %v745_v40, %v745_v40  ;;  %v753_v50 = vmul.f32 %v751_v42, %v751_v42  ;;  %v762_v51 = vstv %s1721_s27  ;;  %v764_v52 = vstv %s1723_s17  ;;  %s1001_s27 = sshll.u32 %s1461_s12, 1  ;;  %s1010_s17 = sshll.u32 %s1337_s6, 5 }
  0xd2   : > { %v735_v53 = vmin.f32 %v729_v44, %v734_v4  ;;  %v742_v54 = vadd.f32 %v741_v46, %v740_v39  ;;  %v758_v55 = vmul.f32 %v756_v47, %v756_v47  ;;  %v759_v56 = vmul.f32 %v757_v48, %v757_v48 }
  0xd3   : > { %v748_v57 = vadd.f32 %v747_v49, %v746_v41  ;;  %v754_v58 = vadd.f32 %v753_v50, %v752_v43  ;;  %v763_v59 = vsub.f32 %v762_v51, %v1620_v32  ;;  %v765_v60 = vsub.f32 %v764_v52, %v1496_v5 }
  0xd4   : > { %843 = vmin.xlane.f32.xlu1 %v735_v53  ;;  %v743_v61 = vmin.f32 %v742_v54, 1e+30  ;;  %v760_v62 = vadd.f32 %v759_v56, %v758_v55  ;;  %v770_v63 = vsub.f32 %v762_v51, %v1628_v35  ;;  %v771_v3 = vsub.f32 %v764_v52, %v1498_v6 }
  0xd5   : > { %v766_v7 = vmul.f32 %v763_v59, %v763_v59  ;;  %v767_v8 = vmul.f32 %v765_v60, %v765_v60  ;;  %v776_v9 = vsub.f32 %v762_v51, %v1631_v36  ;;  %v777_v10 = vsub.f32 %v764_v52, %v1503_v11 }
  0xd6   : > { %v749_v13 = vmin.f32 %v743_v61, %v748_v57  ;;  %v772_v14 = vmul.f32 %v770_v63, %v770_v63  ;;  %v773_v15 = vmul.f32 %v771_v3, %v771_v3  ;;  %v782_v32 = vsub.f32 %v762_v51, %v1636_v45 }
  0xd7   : > { %v768_v16 = vadd.f32 %v767_v8, %v766_v7  ;;  %v778_v5 = vmul.f32 %v776_v9, %v776_v9  ;;  %v779_v17 = vmul.f32 %v777_v10, %v777_v10  ;;  %v783_v18 = vsub.f32 %v764_v52, %v1505_v12 }
  0xd8   : > { %v755_v19 = vmin.f32 %v749_v13, %v754_v58  ;;  %v774_v35 = vadd.f32 %v773_v15, %v772_v14  ;;  %v784_v20 = vmul.f32 %v782_v32, %v782_v32 }
  0xd9   : > { %v769_v6 = vmin.f32 %v768_v16, 1e+30  ;;  %v780_v21 = vadd.f32 %v779_v17, %v778_v5  ;;  %v785_v22 = vmul.f32 %v783_v18, %v783_v18 }
  0xda   : > { %v761_v23 = vmin.f32 %v755_v19, %v760_v62 }
  0xdb   : > { %v775_v36 = vmin.f32 %v769_v6, %v774_v35  ;;  %v786_v24 = vadd.f32 %v785_v22, %v784_v20 }
  0xdc   : > { %854 = vmin.xlane.f32.xlu0 %v761_v23 }
  0xdd   : > { %v781_v11 = vmin.f32 %v775_v36, %v780_v21 }
  0xdf   : > { %v787_v25 = vmin.f32 %v781_v11, %v786_v24 }
  0xe1   : > { %865 = vmin.xlane.f32.xlu1 %v787_v25 }
 0x10f   : > { %v434_v26 = vpop.xlane.xlu0 %433 }
 0x110   : > { %v435_v45 = vrot.slane %v434_v26, 4 }
 0x112   : > { %v436_v27 = vmin.f32 %v434_v26, %v435_v45 }
 0x113   : > { %v458_v28 = vpop.xlane.xlu1 %457 }
 0x114   : > { %v437_v0 = vrot.slane %v436_v27, 2  ;;  %v459_v29 = vrot.slane %v458_v28, 4 }
 0x116   : > { %v460_v12 = vmin.f32 %v458_v28, %v459_v29  ;;  %v438_v30 = vmin.f32 %v436_v27, %v437_v0 }
 0x118   : > { %v439_v31 = vrot.slane %v438_v30, 1  ;;  %v461_v1 = vrot.slane %v460_v12, 2 }
 0x11a   : > { %v446_v33 = vpop.xlane.xlu0 %445  ;;  %v440_v34 = vmin.f32 %v438_v30, %v439_v31  ;;  %v462_v4 = vmin.f32 %v460_v12, %v461_v1 }
 0x11b   : > { %v447_v2 = vrot.slane %v446_v33, 4 }
 0x11c   : > { %1018 = vpush %v440_v34  ;;  %v463_v42 = vrot.slane %v462_v4, 1 }
 0x11d   : > { %v448_v37 = vmin.f32 %v446_v33, %v447_v2 }
 0x11e   : > { %v464_v48 = vmin.f32 %v462_v4, %v463_v42 }
 0x11f   : > { %v449_v38 = vrot.slane %v448_v37, 2 }
 0x121   : > { %v470_v39 = vpop.xlane.xlu1 %469  ;;  %v450_v40 = vmin.f32 %v448_v37, %v449_v38 }
 0x122   : > { %v471_v41 = vrot.slane %v470_v39, 4 }
 0x123   : > { %v451_v43 = vrot.slane %v450_v40, 1 }
 0x124   : > { %v472_v44 = vmin.f32 %v470_v39, %v471_v41 }
 0x125   : > { %v452_v46 = vmin.f32 %v450_v40, %v451_v43 }
 0x126   : > { %v473_v47 = vrot.slane %v472_v44, 2 }
 0x127   : > { %1020 = vpush %v452_v46 }
 0x128   : > { %v482_v49 = vpop.xlane.xlu0 %481  ;;  %1022 = vpush %v464_v48  ;;  %v474_v50 = vmin.f32 %v472_v44, %v473_v47 }
 0x129   : > { %v483_v51 = vrot.slane %v482_v49, 4 }
 0x12a   : > { %v475_v52 = vrot.slane %v474_v50, 1 }
 0x12b   : > { %v484_v53 = vmin.f32 %v482_v49, %v483_v51 }
 0x12c   : > { %v476_v54 = vmin.f32 %v474_v50, %v475_v52 }
 0x12d   : > { %v485_v55 = vrot.slane %v484_v53, 2  ;;  %v494_v56 = vpop.xlane.xlu1 %493 }
 0x12e   : > { %v495_v57 = vrot.slane %v494_v56, 4  ;;  %1024 = vpush %v476_v54 }
 0x12f   : > { %v486_v58 = vmin.f32 %v484_v53, %v485_v55 }
 0x130   : > { %v496_v59 = vmin.f32 %v494_v56, %v495_v57 }
 0x131   : > { %v487_v60 = vrot.slane %v486_v58, 1 }
 0x132   : > { %v497_v61 = vrot.slane %v496_v59, 2 }
 0x133   : > { %v488_v62 = vmin.f32 %v486_v58, %v487_v60 }
 0x134   : > { %v498_v63 = vmin.f32 %v496_v59, %v497_v61 }
 0x135   : > { %v506_v3 = vpop.xlane.xlu0 %505  ;;  %1026 = vpush %v488_v62 }
 0x136   : > { %v507_v7 = vrot.slane %v506_v3, 4  ;;  %v499_v8 = vrot.slane %v498_v63, 1 }
 0x138   : > { %v508_v9 = vmin.f32 %v506_v3, %v507_v7  ;;  %v500_v10 = vmin.f32 %v498_v63, %v499_v8 }
 0x13a   : > { %v509_v13 = vrot.slane %v508_v9, 2  ;;  %v518_v14 = vpop.xlane.xlu1 %517  ;;  %1028 = vpush %v500_v10 }
 0x13b   : > { %v519_v15 = vrot.slane %v518_v14, 4 }
 0x13c   : > { %v510_v32 = vmin.f32 %v508_v9, %v509_v13 }
 0x13d   : > { %v520_v16 = vmin.f32 %v518_v14, %v519_v15 }
 0x13e   : > { %v511_v5 = vrot.slane %v510_v32, 1 }
 0x13f   : > { %v521_v17 = vrot.slane %v520_v16, 2 }
 0x140   : > { %v512_v18 = vmin.f32 %v510_v32, %v511_v5  ;;  %v189_v32 = vlaneseq }
 0x141   : > { %v522_v19 = vmin.f32 %v520_v16, %v521_v17 }
 0x142   : > { %v789_v35 = vpop.xlane.xlu0 %788  ;;  %1030 = vpush %v512_v18  ;;  %v1747_v16 = vand.u32 127, %v189_v32 }
 0x143   : > { %v790_v20 = vrot.slane %v789_v35, 4  ;;  %v523_v6 = vrot.slane %v522_v19, 1 }
 0x144   : > { %vm442_vm0 = vcmp.eq.s32.totalorder %v1747_v16, 0  ;;  %vm454_vm1 = vcmp.eq.s32.totalorder %v1747_v16, 1  ;;  %vm466_vm2 = vcmp.eq.s32.totalorder %v1747_v16, 2  ;;  %vm478_vm3 = vcmp.eq.s32.totalorder %v1747_v16, 3 }
 0x145   : > { %v791_v21 = vmin.f32 %v789_v35, %v790_v20  ;;  %v524_v22 = vmin.f32 %v522_v19, %v523_v6  ;;  %vm490_vm4 = vcmp.eq.s32.totalorder %v1747_v16, 4  ;;  %vm502_vm5 = vcmp.eq.s32.totalorder %v1747_v16, 5 }
 0x146   : > { %vm514_vm6 = vcmp.eq.s32.totalorder %v1747_v16, 6  ;;  %vm526_vm7 = vcmp.eq.s32.totalorder %v1747_v16, 7  ;;  %vm542_vm13 = vcmp.lt.s32.totalorder %v1747_v16, 8 }
 0x147   : > { %v792_v23 = vrot.slane %v791_v21, 2  ;;  %v800_v36 = vpop.xlane.xlu1 %799  ;;  %1032 = vpush %v524_v22 }
 0x148   : > { %v801_v24 = vrot.slane %v800_v36, 4 }
 0x149   : > { %v793_v11 = vmin.f32 %v791_v21, %v792_v23 }
 0x14a   : > { %v802_v25 = vmin.f32 %v800_v36, %v801_v24 }
 0x14b   : > { %v794_v26 = vrot.slane %v793_v11, 1 }
 0x14c   : > { %v803_v45 = vrot.slane %v802_v25, 2 }
 0x14d   : > { %v795_v27 = vmin.f32 %v793_v11, %v794_v26  ;;  %s1019_s18 = spop %1018 }
 0x14e   : > { %v804_v28 = vmin.f32 %v802_v25, %v803_v45  ;;  %v443_v5 = vstv %s1019_s18  ;;  %s187_s18 = scalar_lea.vmem [#allocation10], %s1001_s27 }
 0x14f   : > { %v811_v0 = vpop.xlane.xlu0 %810  ;;  %1034 = vpush %v795_v27  ;;  %v444_v18 = vsel %vm442_vm0, %v443_v5, 0.0 }
 0x150   : > { %v812_v29 = vrot.slane %v811_v0, 4  ;;  %v805_v12 = vrot.slane %v804_v28, 1 }
 0x152   : > { %v813_v30 = vmin.f32 %v811_v0, %v812_v29  ;;  %v806_v31 = vmin.f32 %v804_v28, %v805_v12 }
 0x154   : > { %v814_v1 = vrot.slane %v813_v30, 2  ;;  %v822_v33 = vpop.xlane.xlu1 %821  ;;  %1036 = vpush %v806_v31 }
 0x155   : > { %v823_v34 = vrot.slane %v822_v33, 4 }
 0x156   : > { %v815_v2 = vmin.f32 %v813_v30, %v814_v1 }
 0x157   : > { %v824_v37 = vmin.f32 %v822_v33, %v823_v34 }
 0x158   : > { %v816_v4 = vrot.slane %v815_v2, 1  ;;  %s1021_s24 = spop %1020 }
 0x159   : > { %v825_v38 = vrot.slane %v824_v37, 2  ;;  %v455_v17 = vstv %s1021_s24  ;;  %s1023_s19 = spop %1022  ;;  %s909_s24 = sshll.u32 %s187_s18, 4  ;;  %s1798_s24 = int_to_ptr.vmem [resolvable:$true] %s909_s24 }
 0x15a   : > { %v817_v39 = vmin.f32 %v815_v2, %v816_v4  ;;  %v456_v19 = vsel %vm454_vm1, %v455_v17, %v444_v18  ;;  %v467_v35 = vstv %s1023_s19  ;;  %s1195_s6 = scalar_lea.vmem %s1798_s24, 32 }
 0x15b   : > { %v826_v40 = vmin.f32 %v824_v37, %v825_v38  ;;  %v468_v20 = vsel %vm466_vm2, %v467_v35, %v456_v19  ;;  %p1196_p12 = scmp.ne.s32.totalorder %s1798_s24, %s1195_s6 }
 0x15c   : > { %v833_v41 = vpop.xlane.xlu0 %832  ;;  %1038 = vpush %v817_v39 }
 0x15d   : > { %v834_v42 = vrot.slane %v833_v41, 4  ;;  %v827_v43 = vrot.slane %v826_v40, 1  ;;  %p1197_p0 = pnand %p1196_p12, %p1410_p6 }
 0x15f   : > { %v835_v44 = vmin.f32 %v833_v41, %v834_v42  ;;  %v828_v46 = vmin.f32 %v826_v40, %v827_v43  ;;  %s1025_s22 = spop %1024  ;;  %p1198_p2 = pneg %p1197_p0 }
 0x160   : > { %v479_v6 = vstv %s1025_s22 }
 0x161   : > { %v836_v47 = vrot.slane %v835_v44, 2  ;;  %v844_v48 = vpop.xlane.xlu1 %843  ;;  %1040 = vpush %v828_v46  ;;  %v480_v21 = vsel %vm478_vm3, %v479_v6, %v468_v20 }
 0x162   : > { %v845_v49 = vrot.slane %v844_v48, 4 }
 0x163   : > { %v837_v50 = vmin.f32 %v835_v44, %v836_v47 }
 0x164   : > { %v846_v51 = vmin.f32 %v844_v48, %v845_v49 }
 0x165   : > { %v838_v52 = vrot.slane %v837_v50, 1 }
 0x166   : > { %v847_v53 = vrot.slane %v846_v51, 2  ;;  %s1027_s23 = spop %1026 }
 0x167   : > { %v839_v54 = vmin.f32 %v837_v50, %v838_v52  ;;  %v491_v22 = vstv %s1027_s23  ;;  %s1796_s23 = scalar_lea.hbm %s1843_s4, %s1010_s17 }
 0x168   : > { %v848_v55 = vmin.f32 %v846_v51, %v847_v53  ;;  %v492_v23 = vsel %vm490_vm4, %v491_v22, %v480_v21 }
 0x169   : > { %v855_v56 = vpop.xlane.xlu0 %854  ;;  %1042 = vpush %v839_v54 }
 0x16a   : > { %v856_v57 = vrot.slane %v855_v56, 4  ;;  %v849_v58 = vrot.slane %v848_v55, 1 }
 0x16b   : > { %s1029_s25 = spop %1028 }
 0x16c   : > { %v857_v59 = vmin.f32 %v855_v56, %v856_v57  ;;  %v850_v60 = vmin.f32 %v848_v55, %v849_v58  ;;  %v503_v36 = vstv %s1029_s25  ;;  %v192_v57 = vshrl.u32 %v189_v32, 7  ;;  %s896_s25 = scalar_lea.sflag [#allocation7], %s1461_s12 }
 0x16d   : > { %v504_v11 = vsel %vm502_vm5, %v503_v36, %v492_v23 }
 0x16e   : > { %v858_v61 = vrot.slane %v857_v59, 2  ;;  %v866_v62 = vpop.xlane.xlu1 %865  ;;  %1044 = vpush %v850_v60  ;;  %vm544_vm15 = vcmp.eq.s32.totalorder %v192_v57, 0 }
 0x16f   : > { %v867_v63 = vrot.slane %v866_v62, 4 }
 0x170   : > { %v859_v3 = vmin.f32 %v857_v59, %v858_v61 }
 0x171   : > { %v868_v7 = vmin.f32 %v866_v62, %v867_v63 }
 0x172   : > { %v860_v8 = vrot.slane %v859_v3, 1 }
 0x173   : > { %v869_v9 = vrot.slane %v868_v7, 2  ;;  %s1031_s8 = spop %1030 }
 0x174   : > { %v861_v10 = vmin.f32 %v859_v3, %v860_v8  ;;  %v515_v24 = vstv %s1031_s8  ;;  %s1275_s8 = smov [#allocation10]  }
 0x175   : > { %v870_v13 = vmin.f32 %v868_v7, %v869_v9  ;;  %v516_v25 = vsel %vm514_vm6, %v515_v24, %v504_v11 }
 0x176   : > { %1046 = vpush %v861_v10 }
 0x177   : > { %v871_v14 = vrot.slane %v870_v13, 1 }
 0x178   : > { %s1033_s26 = spop %1032 }
 0x179   : > { %v872_v15 = vmin.f32 %v870_v13, %v871_v14  ;;  %v527_v26 = vstv %s1033_s26  ;;  %s1199_s26 = sshll.u32 %s1275_s8, 4  ;;  %s1200_s26 = int_to_ptr.vmem [resolvable:$false] %s1199_s26 }
 0x17a   : > { %v528_v45 = vsel %vm526_vm7, %v527_v26, %v516_v25  ;;  %p1202_p4 = scmp.lt.s32.totalorder %s1798_s24, %s1200_s26 }
 0x17b   : > { %1048 = vpush %v872_v15  ;;  %v529_v27 = vmax.f32 %v528_v45, 0.0 }
 0x17d   : > { %1111 = vrsqrt.f32 %v529_v27  ;;  %vm532_vm8 = vcmp.eq.f32.partialorder %v529_v27, inf  ;;  %v535_v47 = vand.u32 2147483648, %v529_v27  ;;  %vm534_vm9 = vcmp.eq.f32.partialorder %v529_v27, 0.0 }
 0x180   : > { %s1035_s20 = spop %1034 }
 0x181   : > { %v797_v28 = vstv %s1035_s20  ;;  %s1201_s20 = scalar_lea.vmem %s1200_s26, 64 }
 0x182   : > { %v798_v0 = vsel %vm442_vm0, %v797_v28, 0.0  ;;  %vm890_vm0 = vcmp.eq.s32.totalorder %v192_v57, 1  ;;  %p1203_p7 = scmp.lt.s32.totalorder %s1201_s20, %s1195_s6 }
 0x184   : > { %p1204_p11 = por %p1203_p7, %p1202_p4 }
 0x185   : > { %s1037_s15 = spop %1036 }
 0x186   : > { %v808_v29 = vstv %s1037_s15  ;;  %p1205_p1 = pnand %p1204_p11, %p1198_p2 }
 0x187   : > { %v809_v30 = vsel %vm454_vm1, %v808_v29, %v798_v0  ;;  %v1112_v4 = vpop.eup %1111 }
 0x188   : > { %v531_v40 = vmul.f32 %v1112_v4, %v529_v27 }
 0x18a   : > { %v533_v46 = vsel %vm532_vm8, %v529_v27, %v531_v40 }
 0x18b   : > { %v536_v48 = vsel %vm534_vm9, %v535_v47, %v533_v46 }
 0x18c   : > { %v538_v49 = vsub.f32 1.0, %v536_v48  ;;  %vm537_vm10 = vcmp.gt.f32.partialorder %v536_v48, 1.0 }
 0x18d   : > { %s1039_s16 = spop %1038 }
 0x18e   : > { %v819_v12 = vstv %s1039_s16  ;;  %v539_v50 = vmul.f32 %v538_v49, %v538_v49 }
 0x18f   : > { %v820_v31 = vsel %vm466_vm2, %v819_v12, %v809_v30 }
 0x190   : > { %v540_v53 = vsel %vm537_vm10, 0.0, %v539_v50 }
 0x191   : > { %v541_v58 = vmul.f32 10.0, %v540_v53 }
 0x192   : > { %s1041_s21 = spop %1040 }
 0x193   : > { %v830_v1 = vstv %s1041_s21  ;;  %v543_v61 = vsel %vm542_vm13, %v541_v58, 0.0 }
 0x194   : > { %v831_v34 = vsel %vm478_vm3, %v830_v1, %v820_v31  ;;  %v547_v3 = vsel %vm544_vm15, %v543_v61, 0.0 }
 0x19a   : > { %s1043_s10 = spop %1042 }
 0x19b   : > { %v841_v33 = vstv %s1043_s10 }
 0x19c   : > { %v842_v2 = vsel %vm490_vm4, %v841_v33, %v831_v34 }
 0x19f   : > { %s1045_s28 = spop %1044 }
 0x1a0   : > { %v852_v37 = vstv %s1045_s28 }
 0x1a1   : > { %v853_v39 = vsel %vm502_vm5, %v852_v37, %v842_v2 }
 0x1a7   : > { %s1047_s13 = spop %1046 }
 0x1a8   : > { %v863_v38 = vstv %s1047_s13 }
 0x1a9   : > { %v864_v41 = vsel %vm514_vm6, %v863_v38, %v853_v39 }
 0x1ac   : > { %s1049_s11 = spop %1048 }
 0x1ad   : > { %v874_v42 = vstv %s1049_s11 }
 0x1ae   : > { %v875_v43 = vsel %vm526_vm7, %v874_v42, %v864_v41 }
 0x1af   : > { %v876_v44 = vmax.f32 %v875_v43, 0.0 }
 0x1b1   : > { %1113 = vrsqrt.f32 %v876_v44  ;;  %vm879_vm11 = vcmp.eq.f32.partialorder %v876_v44, inf  ;;  %v882_v54 = vand.u32 2147483648, %v876_v44  ;;  %vm881_vm12 = vcmp.eq.f32.partialorder %v876_v44, 0.0 }
 0x1bb   : > { %v1114_v51 = vpop.eup %1113 }
 0x1bc   : > { %v878_v52 = vmul.f32 %v1114_v51, %v876_v44 }
 0x1be   : > { %v880_v55 = vsel %vm879_vm11, %v876_v44, %v878_v52 }
 0x1bf   : > { %v883_v56 = vsel %vm881_vm12, %v882_v54, %v880_v55 }
 0x1c0   : > { %v885_v59 = vsub.f32 1.0, %v883_v56  ;;  %vm884_vm14 = vcmp.gt.f32.partialorder %v883_v56, 1.0 }
 0x1c2   : > { %v886_v60 = vmul.f32 %v885_v59, %v885_v59 }
 0x1c4   : > { %v887_v62 = vsel %vm884_vm14, 0.0, %v886_v60 }
 0x1c5   : > { %v888_v63 = vmul.f32 10.0, %v887_v62 }
 0x1c7   : > { %v889_v7 = vsel %vm542_vm13, %v888_v63, 0.0 }
 0x1c8   : > { %v893_v8 = vsel %vm890_vm0, %v889_v7, %v547_v3 }
 0x1c9   : > { %894 = vst [vmem:[%s187_s18] sm:$0x3] %v893_v8 }
 0x1ca   : > { %1208 = shalt.err (!%p1205_p1)
}
 0x1cb   : > { %s1209_s12 = scalar_lea.hbm %s1796_s23, 32  ;;  %s1213_s21 = scalar_lea.hbm %s1843_s4, 64 }
 0x1cc   : > { %p1210_p3 = scmp.ne.s32.totalorder %s1796_s23, %s1209_s12  ;;  %p1214_p13 = scmp.lt.u32.totalorder %s1796_s23, %s1843_s4 }
 0x1cd   : > { %p1215_p5 = scmp.lt.u32.totalorder %s1213_s21, %s1209_s12  ;;  %p1217_p12 = scmp.lt.u32.totalorder %s1209_s12, %s1796_s23 }
 0x1ce   : > { %p1211_p9 = pnand %p1210_p3, %p1410_p6 }
 0x1cf   : > { %p1216_p10 = por %p1215_p5, %p1214_p13 }
 0x1d0   : > { %p1212_p8 = pneg %p1211_p9 }
 0x1d1   : > { %p1218_p0 = por %p1217_p12, %p1216_p10 }
 0x1d3   : > { %p1219_p2 = pnand %p1218_p0, %p1212_p8 }
 0x1d5   : > { %1222 = shalt.err (!%p1219_p2)
}
 0x1d6   : > { %1056 = dma.vmem_to_hbm [thread:$0]  (%p1410_p6), %s1798_s24, 32, %s1796_s23, %s896_s25  }
 0x1d7 PF: > { %s921_s13 = sand.u32 1, %s1255_s0   ;;  %p1859_p4 = scmp.ne.s32.totalorder %s1849_s9, 0 }
 0x1d8   : > { %p1860_p7 = scmp.ge.s32.totalorder %s1267_s5, 2  ;;  %s922_s11 = scalar_lea.sflag [#allocation7], %s921_s13 }
 0x1da   : > { %p1067_p11 = pnand %p1860_p7, %p1859_p4 }
 0x1dc   : > { %1250 = dma.done.wait (!%p1067_p11), %s922_s11, 32  }
 0x1dd   : > { %1252 = vsyncadd (!%p1067_p11), %s922_s11, 4294967264  ;;  %p26_p1 = scmp.ge.s32.totalorder %s1372_s14, 4   ;;  %s1861_s0 = smov %s1259_s1 }
 0x1de   : > { %s1862_s1 = smov %s1263_s30  ;;  %s1863_s30 = smov %s1406_s29 }
 0x1df   : > { %s1864_s5 = smov %s1372_s14  ;;  %28 = sbr.rel (!%p26_p1) target bundleno = 28 (0x1c), region = 78 }
 0x1e6   :  { %927 = vsyncpa [#allocation6], 1 }
 0x1e7   :  { %929 = vsyncpa [#allocation6 + $0x1], 1 }
 0x1e8   :  { %930 = vsyncpa [#allocation9], 1 }
 0x1e9   :  { %931 = vsyncpa [#allocation7], 1 }
 0x1ea   :  { %933 = vsyncpa [#allocation7 + $0x1], 1 }

</bundles_post_ra>
